<compile_context>
chip_gen: v7x
topology: tpu7x:2x2x1
jax: 0.10.0
libtpu: 0.0.40
codegen_flags: <defaults>
</compile_context>

<pallas_src>
import functools

import jax
import jax.numpy as jnp
import numpy as np
from jax.experimental import pallas as pl
from jax.experimental.pallas import tpu as pltpu

IN1, H1 = 6, 10
IN2, H2 = 10, 60
OUT = 5

GP1 = 32            # per-gate lane padding, layer 1  -> G1 = 128 (one vreg wide)
G1 = 4 * GP1
GP2 = 64            # per-gate lane padding, layer 2  -> G2 = 256 (two vregs wide)
G2 = 4 * GP2


def simple_lstm_kernel(
    x_ref,        # (T*B, IN1)   time-major rows: row t*B + b == x[b, t]
    wih1_ref,     # (IN1, G1)    gate-packed [i|f|o|g], each gate padded to GP1
    b1_ref,       # (1, G1)      merged b_ih + b_hh, gate-packed
    whh1_ref,     # (H1, G1)
    wih2_ref,     # (IN2=H1, G2)
    whh2_hbm,     # (H2, G2)     raw HBM ref (memory_space=ANY), DMA'd manually
    b2_ref,       # (1, G2)
    wfc_ref,      # (H2, OUT)
    bfc_ref,      # (1, OUT)
    out_ref,      # (B, OUT)
    whh2_vmem,    # VMEM scratch (H2, G2)
    dma_sem,      # DMA semaphore
    *, seq_len, batch,
):
    T, B = seq_len, batch

    # ---- kick off the largest weight copy; overlap with prologue + layer-1 step 0 ----
    whh2_cp = pltpu.make_async_copy(whh2_hbm, whh2_vmem, dma_sem)
    whh2_cp.start()

    # ---- hoisted: layer-1 input projection for ALL timesteps (no recurrent dep) ----
    gx1_all = (
        jnp.dot(x_ref[...], wih1_ref[...], preferred_element_type=jnp.float32)
        + b1_ref[...]
    )  # (T*B, G1)  -> only 2 vregs after the gate-width shrink

    # ---- hoisted small loads / broadcasts (JAX does not CSE broadcast_in_dim) ----
    whh1 = whh1_ref[...]                             # (H1, G1)
    wih2 = wih2_ref[...]                             # (H1, G2)
    b2b = jnp.broadcast_to(b2_ref[...], (B, G2))     # (B, G2)

    h1 = jnp.zeros((B, H1), jnp.float32)
    c1 = jnp.zeros((B, H1), jnp.float32)
    h2 = jnp.zeros((B, H2), jnp.float32)
    c2 = jnp.zeros((B, H2), jnp.float32)

    whh2 = None
    # Fully unrolled time loop (T static & small); all slice offsets static.
    for t in range(T):
        # -------- LSTM layer 1 (only the recurrent h-projection inside the loop) -----
        g1 = gx1_all[t * B:(t + 1) * B, :] + jnp.dot(
            h1, whh1, preferred_element_type=jnp.float32
        )  # (B, G1)
        # gate order [i|f|o|g]: one sigmoid over the contiguous 3-gate block, one tanh
        s1 = jax.nn.sigmoid(g1[:, :3 * GP1])
        i1 = s1[:, 0:H1]
        f1 = s1[:, GP1:GP1 + H1]
        o1 = s1[:, 2 * GP1:2 * GP1 + H1]
        gg1 = jnp.tanh(g1[:, 3 * GP1:3 * GP1 + H1])
        c1 = f1 * c1 + i1 * gg1
        h1 = o1 * jnp.tanh(c1)

        # ReLU on layer-1 output sequence (relu1) before feeding layer 2
        x2 = jnp.maximum(h1, 0.0)

        if t == 0:
            # first use of whh2 is right below; copy has been in flight since entry
            whh2_cp.wait()
            whh2 = whh2_vmem[...]                    # (H2, G2)

        # -------- LSTM layer 2 -------------------------------------------------------
        g2 = (
            jnp.dot(x2, wih2, preferred_element_type=jnp.float32)
            + jnp.dot(h2, whh2, preferred_element_type=jnp.float32)
            + b2b
        )  # (B, G2)
        s2 = jax.nn.sigmoid(g2[:, :3 * GP2])
        i2 = s2[:, 0:H2]
        f2 = s2[:, GP2:GP2 + H2]
        o2 = s2[:, 2 * GP2:2 * GP2 + H2]
        gg2 = jnp.tanh(g2[:, 3 * GP2:3 * GP2 + H2])
        c2 = f2 * c2 + i2 * gg2
        h2 = o2 * jnp.tanh(c2)

    # ---- head: ReLU(last step) -> Dropout(eval == identity) -> Linear -> log_softmax
    # TODO(synk): Dropout(p=0.25) is identity in eval mode; training-mode masking not implemented.
    feat = jnp.maximum(h2, 0.0)
    logits = (
        jnp.dot(feat, wfc_ref[...], preferred_element_type=jnp.float32) + bfc_ref[...]
    )
    m = jnp.max(logits, axis=1, keepdims=True)
    shifted = logits - m
    lse = jnp.log(jnp.sum(jnp.exp(shifted), axis=1, keepdims=True))
    out_ref[...] = shifted - lse


@jax.jit
def simple_lstm_forward(x, params):
    """x: (B, T, IN1) float32, batch_first like PyTorch."""
    B, T, _ = x.shape
    # Time-major flatten so row (t*B + b) == x[b, t]; tiny one-off XLA reorder.
    x2d = jnp.transpose(x, (1, 0, 2)).reshape(T * B, IN1)

    kernel = functools.partial(simple_lstm_kernel, seq_len=T, batch=B)
    vmem = pl.BlockSpec(memory_space=pltpu.MemorySpace.VMEM)   # whole array in VMEM
    hbm = pl.BlockSpec(memory_space=pl.ANY)                    # raw ref; manual DMA
    return pl.pallas_call(
        kernel,
        out_shape=jax.ShapeDtypeStruct((B, OUT), jnp.float32),
        in_specs=[vmem, vmem, vmem, vmem, vmem, hbm, vmem, vmem, vmem],
        out_specs=vmem,
        scratch_shapes=[
            pltpu.VMEM((H2, G2), jnp.float32),     # whh2 landing buffer
            pltpu.SemaphoreType.DMA(()),
        ],
    )(
        x2d,
        params["wih1_p"], params["b1_p"], params["whh1_p"],
        params["wih2_p"], params["whh2_p"], params["b2_p"],
        params["wfc_t"], params["bfc"],
    )


def _pack_gates(w_t, hidden, gp):
    """(in_dim, 4*hidden), PyTorch gate order [i|f|g|o] -> (in_dim, 4*gp) in order
    [i|f|o|g], each gate zero-padded to gp lanes (sigmoid gates contiguous, tanh last)."""
    src_order = (0, 1, 3, 2)   # destination slot k <- PyTorch gate src_order[k]
    out = jnp.zeros((w_t.shape[0], 4 * gp), jnp.float32)
    for k, s in enumerate(src_order):
        out = out.at[:, k * gp:k * gp + hidden].set(w_t[:, s * hidden:(s + 1) * hidden])
    return out


def init_params(key):
    """Deterministic init mirroring PyTorch LSTM/Linear shapes."""
    keys = jax.random.split(key, 10)

    def unif(k, shape, bound):
        return jax.random.uniform(k, shape, jnp.float32, -bound, bound)

    s1 = 1.0 / np.sqrt(H1)
    s2 = 1.0 / np.sqrt(H2)
    sf = 1.0 / np.sqrt(H2)
    return {
        "wih1": unif(keys[0], (4 * H1, IN1), s1),
        "whh1": unif(keys[1], (4 * H1, H1), s1),
        "bih1": unif(keys[2], (4 * H1,), s1),
        "bhh1": unif(keys[3], (4 * H1,), s1),
        "wih2": unif(keys[4], (4 * H2, IN2), s2),
        "whh2": unif(keys[5], (4 * H2, H2), s2),
        "bih2": unif(keys[6], (4 * H2,), s2),
        "bhh2": unif(keys[7], (4 * H2,), s2),
        "wfc": unif(keys[8], (OUT, H2), sf),
        "bfc": unif(keys[9], (OUT,), sf),
    }


def pack_params(raw):
    """Transpose to (in, out), merge b_ih+b_hh, reorder gates to [i|f|o|g], pad per gate."""
    return {
        "wih1_p": _pack_gates(raw["wih1"].T, H1, GP1),
        "whh1_p": _pack_gates(raw["whh1"].T, H1, GP1),
        "b1_p": _pack_gates((raw["bih1"] + raw["bhh1"]).reshape(1, -1), H1, GP1),
        "wih2_p": _pack_gates(raw["wih2"].T, H2, GP2),
        "whh2_p": _pack_gates(raw["whh2"].T, H2, GP2),
        "b2_p": _pack_gates((raw["bih2"] + raw["bhh2"]).reshape(1, -1), H2, GP2),
        "wfc_t": raw["wfc"].T,
        "bfc": raw["bfc"].reshape(1, -1),
    }


def ref_forward(x, raw):
    """Pure-JAX reference of the PyTorch forward (eval mode), PyTorch-shaped weights."""
    B, T, _ = x.shape

    def cell(x_t, h, c, wih, whh, b, hidden):
        g = x_t @ wih.T + h @ whh.T + b
        i = jax.nn.sigmoid(g[:, :hidden])
        f = jax.nn.sigmoid(g[:, hidden:2 * hidden])
        gg = jnp.tanh(g[:, 2 * hidden:3 * hidden])
        o = jax.nn.sigmoid(g[:, 3 * hidden:])
        c = f * c + i * gg
        h = o * jnp.tanh(c)
        return h, c

    b1 = raw["bih1"] + raw["bhh1"]
    b2 = raw["bih2"] + raw["bhh2"]
    h1 = jnp.zeros((B, H1)); c1 = jnp.zeros((B, H1))
    h2 = jnp.zeros((B, H2)); c2 = jnp.zeros((B, H2))
    for t in range(T):
        h1, c1 = cell(x[:, t], h1, c1, raw["wih1"], raw["whh1"], b1, H1)
        h2, c2 = cell(jnp.maximum(h1, 0.0), h2, c2, raw["wih2"], raw["whh2"], b2, H2)
    feat = jnp.maximum(h2, 0.0)
    logits = feat @ raw["wfc"].T + raw["bfc"]
    return jax.nn.log_softmax(logits, axis=1)


if __name__ == "__main__":
    key = jax.random.PRNGKey(0)
    k_x, k_p = jax.random.split(key)

    B, T = 2, 8
    x = jax.random.normal(k_x, (B, T, IN1), dtype=jnp.float32)
    raw = init_params(k_p)
    params = pack_params(raw)

    out = simple_lstm_forward(x, params)
    out = jax.block_until_ready(out)

    ref = ref_forward(x, raw)
    np.testing.assert_allclose(np.asarray(out), np.asarray(ref), atol=1e-5, rtol=1e-5)

    print("KERNEL_OK")
</pallas_src>

<mosaic_0001>
module attributes {stable_mosaic.version = 11 : i64} {
  func.func @simple_lstm_kernel(%arg0: memref<16x6xf32, #tpu.memory_space<vmem>>, %arg1: memref<6x128xf32, #tpu.memory_space<vmem>>, %arg2: memref<1x128xf32, #tpu.memory_space<vmem>>, %arg3: memref<10x128xf32, #tpu.memory_space<vmem>>, %arg4: memref<10x256xf32, #tpu.memory_space<vmem>>, %arg5: memref<60x256xf32, #tpu.memory_space<any>>, %arg6: memref<1x256xf32, #tpu.memory_space<vmem>>, %arg7: memref<60x5xf32, #tpu.memory_space<vmem>>, %arg8: memref<1x5xf32, #tpu.memory_space<vmem>>, %arg9: memref<2x5xf32, #tpu.memory_space<vmem>>, %arg10: memref<60x256xf32, #tpu.memory_space<vmem>>, %arg11: memref<!tpu.dma_semaphore, #tpu.memory_space<semaphore_mem>>) attributes {dimension_semantics = [], scalar_prefetch = 0 : i64, scratch_operands = 2 : i64, tpu.core_type = #tpu.core_type<tc>} {
    tpu.enqueue_dma source(%arg5 : memref<60x256xf32, #tpu.memory_space<any>>) target(%arg10 : memref<60x256xf32, #tpu.memory_space<vmem>>) target_semaphore(%arg11 : memref<!tpu.dma_semaphore, #tpu.memory_space<semaphore_mem>>)
    %c0 = arith.constant 0 : index
    %c0_0 = arith.constant 0 : index
    %0 = vector.load %arg0[%c0, %c0_0] : memref<16x6xf32, #tpu.memory_space<vmem>>, vector<16x6xf32>
    %c0_1 = arith.constant 0 : index
    %c0_2 = arith.constant 0 : index
    %1 = vector.load %arg1[%c0_1, %c0_2] : memref<6x128xf32, #tpu.memory_space<vmem>>, vector<6x128xf32>
    %cst = arith.constant dense<0.000000e+00> : vector<16x128xf32>
    %2 = tpu.matmul %0, %1, %cst {dimension_numbers = #tpu.dot_dimension_numbers<[1], [0], [0], [1], [0, 0, 1, 1], [], []>} : vector<16x6xf32>, vector<6x128xf32>, vector<16x128xf32> -> vector<16x128xf32>
    %c0_3 = arith.constant 0 : index
    %c0_4 = arith.constant 0 : index
    %3 = vector.load %arg2[%c0_3, %c0_4] : memref<1x128xf32, #tpu.memory_space<vmem>>, vector<1x128xf32>
    %4 = vector.broadcast %3 : vector<1x128xf32> to vector<16x128xf32>
    %5 = arith.addf %2, %4 : vector<16x128xf32>
    %c0_5 = arith.constant 0 : index
    %c0_6 = arith.constant 0 : index
    %6 = vector.load %arg3[%c0_5, %c0_6] : memref<10x128xf32, #tpu.memory_space<vmem>>, vector<10x128xf32>
    %c0_7 = arith.constant 0 : index
    %c0_8 = arith.constant 0 : index
    %7 = vector.load %arg4[%c0_7, %c0_8] : memref<10x256xf32, #tpu.memory_space<vmem>>, vector<10x256xf32>
    %c0_9 = arith.constant 0 : index
    %c0_10 = arith.constant 0 : index
    %8 = vector.load %arg6[%c0_9, %c0_10] : memref<1x256xf32, #tpu.memory_space<vmem>>, vector<1x256xf32>
    %9 = vector.shape_cast %8 : vector<1x256xf32> to vector<1x256xf32>
    %10 = vector.broadcast %9 : vector<1x256xf32> to vector<2x256xf32>
    %cst_11 = arith.constant 0.000000e+00 : f32
    %11 = vector.broadcast %cst_11 : f32 to vector<2x10xf32>
    %cst_12 = arith.constant 0.000000e+00 : f32
    %12 = vector.broadcast %cst_12 : f32 to vector<2x10xf32>
    %cst_13 = arith.constant 0.000000e+00 : f32
    %13 = vector.broadcast %cst_13 : f32 to vector<2x60xf32>
    %cst_14 = arith.constant 0.000000e+00 : f32
    %14 = vector.broadcast %cst_14 : f32 to vector<2x60xf32>
    %15 = vector.extract_strided_slice %5 {offsets = [0, 0], sizes = [2, 128], strides = [1, 1]} : vector<16x128xf32> to vector<2x128xf32>
    %cst_15 = arith.constant dense<0.000000e+00> : vector<2x128xf32>
    %16 = tpu.matmul %11, %6, %cst_15 {dimension_numbers = #tpu.dot_dimension_numbers<[1], [0], [0], [1], [0, 0, 1, 1], [], []>} : vector<2x10xf32>, vector<10x128xf32>, vector<2x128xf32> -> vector<2x128xf32>
    %17 = arith.addf %15, %16 : vector<2x128xf32>
    %18 = vector.extract_strided_slice %17 {offsets = [0, 0], sizes = [2, 96], strides = [1, 1]} : vector<2x128xf32> to vector<2x96xf32>
    %19 = arith.negf %18 : vector<2x96xf32>
    %20 = math.exp %19 : vector<2x96xf32>
    %cst_16 = arith.constant 1.000000e+00 : f32
    %21 = vector.broadcast %cst_16 : f32 to vector<2x96xf32>
    %22 = arith.addf %21, %20 : vector<2x96xf32>
    %23 = arith.divf %21, %22 : vector<2x96xf32>
    %24 = vector.extract_strided_slice %23 {offsets = [0, 0], sizes = [2, 10], strides = [1, 1]} : vector<2x96xf32> to vector<2x10xf32>
    %25 = vector.extract_strided_slice %23 {offsets = [0, 32], sizes = [2, 10], strides = [1, 1]} : vector<2x96xf32> to vector<2x10xf32>
    %26 = vector.extract_strided_slice %23 {offsets = [0, 64], sizes = [2, 10], strides = [1, 1]} : vector<2x96xf32> to vector<2x10xf32>
    %27 = vector.extract_strided_slice %17 {offsets = [0, 96], sizes = [2, 10], strides = [1, 1]} : vector<2x128xf32> to vector<2x10xf32>
    %28 = math.tanh %27 : vector<2x10xf32>
    %29 = arith.mulf %25, %12 : vector<2x10xf32>
    %30 = arith.mulf %24, %28 : vector<2x10xf32>
    %31 = arith.addf %29, %30 : vector<2x10xf32>
    %32 = math.tanh %31 : vector<2x10xf32>
    %33 = arith.mulf %26, %32 : vector<2x10xf32>
    %cst_17 = arith.constant 0.000000e+00 : f32
    %34 = vector.broadcast %cst_17 : f32 to vector<2x10xf32>
    %35 = arith.maximumf %33, %34 : vector<2x10xf32>
    tpu.wait_dma2 semaphore(%arg11 : memref<!tpu.dma_semaphore, #tpu.memory_space<semaphore_mem>>) src(%arg5 : memref<60x256xf32, #tpu.memory_space<any>>) dst(%arg10 : memref<60x256xf32, #tpu.memory_space<vmem>>)
    %c0_18 = arith.constant 0 : index
    %c0_19 = arith.constant 0 : index
    %36 = vector.load %arg10[%c0_18, %c0_19] : memref<60x256xf32, #tpu.memory_space<vmem>>, vector<60x256xf32>
    %cst_20 = arith.constant dense<0.000000e+00> : vector<2x256xf32>
    %37 = tpu.matmul %35, %7, %cst_20 {dimension_numbers = #tpu.dot_dimension_numbers<[1], [0], [0], [1], [0, 0, 1, 1], [], []>} : vector<2x10xf32>, vector<10x256xf32>, vector<2x256xf32> -> vector<2x256xf32>
    %cst_21 = arith.constant dense<0.000000e+00> : vector<2x256xf32>
    %38 = tpu.matmul %13, %36, %cst_21 {dimension_numbers = #tpu.dot_dimension_numbers<[1], [0], [0], [1], [0, 0, 1, 1], [], []>} : vector<2x60xf32>, vector<60x256xf32>, vector<2x256xf32> -> vector<2x256xf32>
    %39 = arith.addf %37, %38 : vector<2x256xf32>
    %40 = arith.addf %39, %10 : vector<2x256xf32>
    %41 = vector.extract_strided_slice %40 {offsets = [0, 0], sizes = [2, 192], strides = [1, 1]} : vector<2x256xf32> to vector<2x192xf32>
    %42 = arith.negf %41 : vector<2x192xf32>
    %43 = math.exp %42 : vector<2x192xf32>
    %cst_22 = arith.constant 1.000000e+00 : f32
    %44 = vector.broadcast %cst_22 : f32 to vector<2x192xf32>
    %45 = arith.addf %44, %43 : vector<2x192xf32>
    %46 = arith.divf %44, %45 : vector<2x192xf32>
    %47 = vector.extract_strided_slice %46 {offsets = [0, 0], sizes = [2, 60], strides = [1, 1]} : vector<2x192xf32> to vector<2x60xf32>
    %48 = vector.extract_strided_slice %46 {offsets = [0, 64], sizes = [2, 60], strides = [1, 1]} : vector<2x192xf32> to vector<2x60xf32>
    %49 = vector.extract_strided_slice %46 {offsets = [0, 128], sizes = [2, 60], strides = [1, 1]} : vector<2x192xf32> to vector<2x60xf32>
    %50 = vector.extract_strided_slice %40 {offsets = [0, 192], sizes = [2, 60], strides = [1, 1]} : vector<2x256xf32> to vector<2x60xf32>
    %51 = math.tanh %50 : vector<2x60xf32>
    %52 = arith.mulf %48, %14 : vector<2x60xf32>
    %53 = arith.mulf %47, %51 : vector<2x60xf32>
    %54 = arith.addf %52, %53 : vector<2x60xf32>
    %55 = math.tanh %54 : vector<2x60xf32>
    %56 = arith.mulf %49, %55 : vector<2x60xf32>
    %57 = vector.extract_strided_slice %5 {offsets = [2, 0], sizes = [2, 128], strides = [1, 1]} : vector<16x128xf32> to vector<2x128xf32>
    %cst_23 = arith.constant dense<0.000000e+00> : vector<2x128xf32>
    %58 = tpu.matmul %33, %6, %cst_23 {dimension_numbers = #tpu.dot_dimension_numbers<[1], [0], [0], [1], [0, 0, 1, 1], [], []>} : vector<2x10xf32>, vector<10x128xf32>, vector<2x128xf32> -> vector<2x128xf32>
    %59 = arith.addf %57, %58 : vector<2x128xf32>
    %60 = vector.extract_strided_slice %59 {offsets = [0, 0], sizes = [2, 96], strides = [1, 1]} : vector<2x128xf32> to vector<2x96xf32>
    %61 = arith.negf %60 : vector<2x96xf32>
    %62 = math.exp %61 : vector<2x96xf32>
    %cst_24 = arith.constant 1.000000e+00 : f32
    %63 = vector.broadcast %cst_24 : f32 to vector<2x96xf32>
    %64 = arith.addf %63, %62 : vector<2x96xf32>
    %65 = arith.divf %63, %64 : vector<2x96xf32>
    %66 = vector.extract_strided_slice %65 {offsets = [0, 0], sizes = [2, 10], strides = [1, 1]} : vector<2x96xf32> to vector<2x10xf32>
    %67 = vector.extract_strided_slice %65 {offsets = [0, 32], sizes = [2, 10], strides = [1, 1]} : vector<2x96xf32> to vector<2x10xf32>
    %68 = vector.extract_strided_slice %65 {offsets = [0, 64], sizes = [2, 10], strides = [1, 1]} : vector<2x96xf32> to vector<2x10xf32>
    %69 = vector.extract_strided_slice %59 {offsets = [0, 96], sizes = [2, 10], strides = [1, 1]} : vector<2x128xf32> to vector<2x10xf32>
    %70 = math.tanh %69 : vector<2x10xf32>
    %71 = arith.mulf %67, %31 : vector<2x10xf32>
    %72 = arith.mulf %66, %70 : vector<2x10xf32>
    %73 = arith.addf %71, %72 : vector<2x10xf32>
    %74 = math.tanh %73 : vector<2x10xf32>
    %75 = arith.mulf %68, %74 : vector<2x10xf32>
    %cst_25 = arith.constant 0.000000e+00 : f32
    %76 = vector.broadcast %cst_25 : f32 to vector<2x10xf32>
    %77 = arith.maximumf %75, %76 : vector<2x10xf32>
    %cst_26 = arith.constant dense<0.000000e+00> : vector<2x256xf32>
    %78 = tpu.matmul %77, %7, %cst_26 {dimension_numbers = #tpu.dot_dimension_numbers<[1], [0], [0], [1], [0, 0, 1, 1], [], []>} : vector<2x10xf32>, vector<10x256xf32>, vector<2x256xf32> -> vector<2x256xf32>
    %cst_27 = arith.constant dense<0.000000e+00> : vector<2x256xf32>
    %79 = tpu.matmul %56, %36, %cst_27 {dimension_numbers = #tpu.dot_dimension_numbers<[1], [0], [0], [1], [0, 0, 1, 1], [], []>} : vector<2x60xf32>, vector<60x256xf32>, vector<2x256xf32> -> vector<2x256xf32>
    %80 = arith.addf %78, %79 : vector<2x256xf32>
    %81 = arith.addf %80, %10 : vector<2x256xf32>
    %82 = vector.extract_strided_slice %81 {offsets = [0, 0], sizes = [2, 192], strides = [1, 1]} : vector<2x256xf32> to vector<2x192xf32>
    %83 = arith.negf %82 : vector<2x192xf32>
    %84 = math.exp %83 : vector<2x192xf32>
    %cst_28 = arith.constant 1.000000e+00 : f32
    %85 = vector.broadcast %cst_28 : f32 to vector<2x192xf32>
    %86 = arith.addf %85, %84 : vector<2x192xf32>
    %87 = arith.divf %85, %86 : vector<2x192xf32>
    %88 = vector.extract_strided_slice %87 {offsets = [0, 0], sizes = [2, 60], strides = [1, 1]} : vector<2x192xf32> to vector<2x60xf32>
    %89 = vector.extract_strided_slice %87 {offsets = [0, 64], sizes = [2, 60], strides = [1, 1]} : vector<2x192xf32> to vector<2x60xf32>
    %90 = vector.extract_strided_slice %87 {offsets = [0, 128], sizes = [2, 60], strides = [1, 1]} : vector<2x192xf32> to vector<2x60xf32>
    %91 = vector.extract_strided_slice %81 {offsets = [0, 192], sizes = [2, 60], strides = [1, 1]} : vector<2x256xf32> to vector<2x60xf32>
    %92 = math.tanh %91 : vector<2x60xf32>
    %93 = arith.mulf %89, %54 : vector<2x60xf32>
    %94 = arith.mulf %88, %92 : vector<2x60xf32>
    %95 = arith.addf %93, %94 : vector<2x60xf32>
    %96 = math.tanh %95 : vector<2x60xf32>
    %97 = arith.mulf %90, %96 : vector<2x60xf32>
    %98 = vector.extract_strided_slice %5 {offsets = [4, 0], sizes = [2, 128], strides = [1, 1]} : vector<16x128xf32> to vector<2x128xf32>
    %cst_29 = arith.constant dense<0.000000e+00> : vector<2x128xf32>
    %99 = tpu.matmul %75, %6, %cst_29 {dimension_numbers = #tpu.dot_dimension_numbers<[1], [0], [0], [1], [0, 0, 1, 1], [], []>} : vector<2x10xf32>, vector<10x128xf32>, vector<2x128xf32> -> vector<2x128xf32>
    %100 = arith.addf %98, %99 : vector<2x128xf32>
    %101 = vector.extract_strided_slice %100 {offsets = [0, 0], sizes = [2, 96], strides = [1, 1]} : vector<2x128xf32> to vector<2x96xf32>
    %102 = arith.negf %101 : vector<2x96xf32>
    %103 = math.exp %102 : vector<2x96xf32>
    %cst_30 = arith.constant 1.000000e+00 : f32
    %104 = vector.broadcast %cst_30 : f32 to vector<2x96xf32>
    %105 = arith.addf %104, %103 : vector<2x96xf32>
    %106 = arith.divf %104, %105 : vector<2x96xf32>
    %107 = vector.extract_strided_slice %106 {offsets = [0, 0], sizes = [2, 10], strides = [1, 1]} : vector<2x96xf32> to vector<2x10xf32>
    %108 = vector.extract_strided_slice %106 {offsets = [0, 32], sizes = [2, 10], strides = [1, 1]} : vector<2x96xf32> to vector<2x10xf32>
    %109 = vector.extract_strided_slice %106 {offsets = [0, 64], sizes = [2, 10], strides = [1, 1]} : vector<2x96xf32> to vector<2x10xf32>
    %110 = vector.extract_strided_slice %100 {offsets = [0, 96], sizes = [2, 10], strides = [1, 1]} : vector<2x128xf32> to vector<2x10xf32>
    %111 = math.tanh %110 : vector<2x10xf32>
    %112 = arith.mulf %108, %73 : vector<2x10xf32>
    %113 = arith.mulf %107, %111 : vector<2x10xf32>
    %114 = arith.addf %112, %113 : vector<2x10xf32>
    %115 = math.tanh %114 : vector<2x10xf32>
    %116 = arith.mulf %109, %115 : vector<2x10xf32>
    %cst_31 = arith.constant 0.000000e+00 : f32
    %117 = vector.broadcast %cst_31 : f32 to vector<2x10xf32>
    %118 = arith.maximumf %116, %117 : vector<2x10xf32>
    %cst_32 = arith.constant dense<0.000000e+00> : vector<2x256xf32>
    %119 = tpu.matmul %118, %7, %cst_32 {dimension_numbers = #tpu.dot_dimension_numbers<[1], [0], [0], [1], [0, 0, 1, 1], [], []>} : vector<2x10xf32>, vector<10x256xf32>, vector<2x256xf32> -> vector<2x256xf32>
    %cst_33 = arith.constant dense<0.000000e+00> : vector<2x256xf32>
    %120 = tpu.matmul %97, %36, %cst_33 {dimension_numbers = #tpu.dot_dimension_numbers<[1], [0], [0], [1], [0, 0, 1, 1], [], []>} : vector<2x60xf32>, vector<60x256xf32>, vector<2x256xf32> -> vector<2x256xf32>
    %121 = arith.addf %119, %120 : vector<2x256xf32>
    %122 = arith.addf %121, %10 : vector<2x256xf32>
    %123 = vector.extract_strided_slice %122 {offsets = [0, 0], sizes = [2, 192], strides = [1, 1]} : vector<2x256xf32> to vector<2x192xf32>
    %124 = arith.negf %123 : vector<2x192xf32>
    %125 = math.exp %124 : vector<2x192xf32>
    %cst_34 = arith.constant 1.000000e+00 : f32
    %126 = vector.broadcast %cst_34 : f32 to vector<2x192xf32>
    %127 = arith.addf %126, %125 : vector<2x192xf32>
    %128 = arith.divf %126, %127 : vector<2x192xf32>
    %129 = vector.extract_strided_slice %128 {offsets = [0, 0], sizes = [2, 60], strides = [1, 1]} : vector<2x192xf32> to vector<2x60xf32>
    %130 = vector.extract_strided_slice %128 {offsets = [0, 64], sizes = [2, 60], strides = [1, 1]} : vector<2x192xf32> to vector<2x60xf32>
    %131 = vector.extract_strided_slice %128 {offsets = [0, 128], sizes = [2, 60], strides = [1, 1]} : vector<2x192xf32> to vector<2x60xf32>
    %132 = vector.extract_strided_slice %122 {offsets = [0, 192], sizes = [2, 60], strides = [1, 1]} : vector<2x256xf32> to vector<2x60xf32>
    %133 = math.tanh %132 : vector<2x60xf32>
    %134 = arith.mulf %130, %95 : vector<2x60xf32>
    %135 = arith.mulf %129, %133 : vector<2x60xf32>
    %136 = arith.addf %134, %135 : vector<2x60xf32>
    %137 = math.tanh %136 : vector<2x60xf32>
    %138 = arith.mulf %131, %137 : vector<2x60xf32>
    %139 = vector.extract_strided_slice %5 {offsets = [6, 0], sizes = [2, 128], strides = [1, 1]} : vector<16x128xf32> to vector<2x128xf32>
    %cst_35 = arith.constant dense<0.000000e+00> : vector<2x128xf32>
    %140 = tpu.matmul %116, %6, %cst_35 {dimension_numbers = #tpu.dot_dimension_numbers<[1], [0], [0], [1], [0, 0, 1, 1], [], []>} : vector<2x10xf32>, vector<10x128xf32>, vector<2x128xf32> -> vector<2x128xf32>
    %141 = arith.addf %139, %140 : vector<2x128xf32>
    %142 = vector.extract_strided_slice %141 {offsets = [0, 0], sizes = [2, 96], strides = [1, 1]} : vector<2x128xf32> to vector<2x96xf32>
    %143 = arith.negf %142 : vector<2x96xf32>
    %144 = math.exp %143 : vector<2x96xf32>
    %cst_36 = arith.constant 1.000000e+00 : f32
    %145 = vector.broadcast %cst_36 : f32 to vector<2x96xf32>
    %146 = arith.addf %145, %144 : vector<2x96xf32>
    %147 = arith.divf %145, %146 : vector<2x96xf32>
    %148 = vector.extract_strided_slice %147 {offsets = [0, 0], sizes = [2, 10], strides = [1, 1]} : vector<2x96xf32> to vector<2x10xf32>
    %149 = vector.extract_strided_slice %147 {offsets = [0, 32], sizes = [2, 10], strides = [1, 1]} : vector<2x96xf32> to vector<2x10xf32>
    %150 = vector.extract_strided_slice %147 {offsets = [0, 64], sizes = [2, 10], strides = [1, 1]} : vector<2x96xf32> to vector<2x10xf32>
    %151 = vector.extract_strided_slice %141 {offsets = [0, 96], sizes = [2, 10], strides = [1, 1]} : vector<2x128xf32> to vector<2x10xf32>
    %152 = math.tanh %151 : vector<2x10xf32>
    %153 = arith.mulf %149, %114 : vector<2x10xf32>
    %154 = arith.mulf %148, %152 : vector<2x10xf32>
    %155 = arith.addf %153, %154 : vector<2x10xf32>
    %156 = math.tanh %155 : vector<2x10xf32>
    %157 = arith.mulf %150, %156 : vector<2x10xf32>
    %cst_37 = arith.constant 0.000000e+00 : f32
    %158 = vector.broadcast %cst_37 : f32 to vector<2x10xf32>
    %159 = arith.maximumf %157, %158 : vector<2x10xf32>
    %cst_38 = arith.constant dense<0.000000e+00> : vector<2x256xf32>
    %160 = tpu.matmul %159, %7, %cst_38 {dimension_numbers = #tpu.dot_dimension_numbers<[1], [0], [0], [1], [0, 0, 1, 1], [], []>} : vector<2x10xf32>, vector<10x256xf32>, vector<2x256xf32> -> vector<2x256xf32>
    %cst_39 = arith.constant dense<0.000000e+00> : vector<2x256xf32>
    %161 = tpu.matmul %138, %36, %cst_39 {dimension_numbers = #tpu.dot_dimension_numbers<[1], [0], [0], [1], [0, 0, 1, 1], [], []>} : vector<2x60xf32>, vector<60x256xf32>, vector<2x256xf32> -> vector<2x256xf32>
    %162 = arith.addf %160, %161 : vector<2x256xf32>
    %163 = arith.addf %162, %10 : vector<2x256xf32>
    %164 = vector.extract_strided_slice %163 {offsets = [0, 0], sizes = [2, 192], strides = [1, 1]} : vector<2x256xf32> to vector<2x192xf32>
    %165 = arith.negf %164 : vector<2x192xf32>
    %166 = math.exp %165 : vector<2x192xf32>
    %cst_40 = arith.constant 1.000000e+00 : f32
    %167 = vector.broadcast %cst_40 : f32 to vector<2x192xf32>
    %168 = arith.addf %167, %166 : vector<2x192xf32>
    %169 = arith.divf %167, %168 : vector<2x192xf32>
    %170 = vector.extract_strided_slice %169 {offsets = [0, 0], sizes = [2, 60], strides = [1, 1]} : vector<2x192xf32> to vector<2x60xf32>
    %171 = vector.extract_strided_slice %169 {offsets = [0, 64], sizes = [2, 60], strides = [1, 1]} : vector<2x192xf32> to vector<2x60xf32>
    %172 = vector.extract_strided_slice %169 {offsets = [0, 128], sizes = [2, 60], strides = [1, 1]} : vector<2x192xf32> to vector<2x60xf32>
    %173 = vector.extract_strided_slice %163 {offsets = [0, 192], sizes = [2, 60], strides = [1, 1]} : vector<2x256xf32> to vector<2x60xf32>
    %174 = math.tanh %173 : vector<2x60xf32>
    %175 = arith.mulf %171, %136 : vector<2x60xf32>
    %176 = arith.mulf %170, %174 : vector<2x60xf32>
    %177 = arith.addf %175, %176 : vector<2x60xf32>
    %178 = math.tanh %177 : vector<2x60xf32>
    %179 = arith.mulf %172, %178 : vector<2x60xf32>
    %180 = vector.extract_strided_slice %5 {offsets = [8, 0], sizes = [2, 128], strides = [1, 1]} : vector<16x128xf32> to vector<2x128xf32>
    %cst_41 = arith.constant dense<0.000000e+00> : vector<2x128xf32>
    %181 = tpu.matmul %157, %6, %cst_41 {dimension_numbers = #tpu.dot_dimension_numbers<[1], [0], [0], [1], [0, 0, 1, 1], [], []>} : vector<2x10xf32>, vector<10x128xf32>, vector<2x128xf32> -> vector<2x128xf32>
    %182 = arith.addf %180, %181 : vector<2x128xf32>
    %183 = vector.extract_strided_slice %182 {offsets = [0, 0], sizes = [2, 96], strides = [1, 1]} : vector<2x128xf32> to vector<2x96xf32>
    %184 = arith.negf %183 : vector<2x96xf32>
    %185 = math.exp %184 : vector<2x96xf32>
    %cst_42 = arith.constant 1.000000e+00 : f32
    %186 = vector.broadcast %cst_42 : f32 to vector<2x96xf32>
    %187 = arith.addf %186, %185 : vector<2x96xf32>
    %188 = arith.divf %186, %187 : vector<2x96xf32>
    %189 = vector.extract_strided_slice %188 {offsets = [0, 0], sizes = [2, 10], strides = [1, 1]} : vector<2x96xf32> to vector<2x10xf32>
    %190 = vector.extract_strided_slice %188 {offsets = [0, 32], sizes = [2, 10], strides = [1, 1]} : vector<2x96xf32> to vector<2x10xf32>
    %191 = vector.extract_strided_slice %188 {offsets = [0, 64], sizes = [2, 10], strides = [1, 1]} : vector<2x96xf32> to vector<2x10xf32>
    %192 = vector.extract_strided_slice %182 {offsets = [0, 96], sizes = [2, 10], strides = [1, 1]} : vector<2x128xf32> to vector<2x10xf32>
    %193 = math.tanh %192 : vector<2x10xf32>
    %194 = arith.mulf %190, %155 : vector<2x10xf32>
    %195 = arith.mulf %189, %193 : vector<2x10xf32>
    %196 = arith.addf %194, %195 : vector<2x10xf32>
    %197 = math.tanh %196 : vector<2x10xf32>
    %198 = arith.mulf %191, %197 : vector<2x10xf32>
    %cst_43 = arith.constant 0.000000e+00 : f32
    %199 = vector.broadcast %cst_43 : f32 to vector<2x10xf32>
    %200 = arith.maximumf %198, %199 : vector<2x10xf32>
    %cst_44 = arith.constant dense<0.000000e+00> : vector<2x256xf32>
    %201 = tpu.matmul %200, %7, %cst_44 {dimension_numbers = #tpu.dot_dimension_numbers<[1], [0], [0], [1], [0, 0, 1, 1], [], []>} : vector<2x10xf32>, vector<10x256xf32>, vector<2x256xf32> -> vector<2x256xf32>
    %cst_45 = arith.constant dense<0.000000e+00> : vector<2x256xf32>
    %202 = tpu.matmul %179, %36, %cst_45 {dimension_numbers = #tpu.dot_dimension_numbers<[1], [0], [0], [1], [0, 0, 1, 1], [], []>} : vector<2x60xf32>, vector<60x256xf32>, vector<2x256xf32> -> vector<2x256xf32>
    %203 = arith.addf %201, %202 : vector<2x256xf32>
    %204 = arith.addf %203, %10 : vector<2x256xf32>
    %205 = vector.extract_strided_slice %204 {offsets = [0, 0], sizes = [2, 192], strides = [1, 1]} : vector<2x256xf32> to vector<2x192xf32>
    %206 = arith.negf %205 : vector<2x192xf32>
    %207 = math.exp %206 : vector<2x192xf32>
    %cst_46 = arith.constant 1.000000e+00 : f32
    %208 = vector.broadcast %cst_46 : f32 to vector<2x192xf32>
    %209 = arith.addf %208, %207 : vector<2x192xf32>
    %210 = arith.divf %208, %209 : vector<2x192xf32>
    %211 = vector.extract_strided_slice %210 {offsets = [0, 0], sizes = [2, 60], strides = [1, 1]} : vector<2x192xf32> to vector<2x60xf32>
    %212 = vector.extract_strided_slice %210 {offsets = [0, 64], sizes = [2, 60], strides = [1, 1]} : vector<2x192xf32> to vector<2x60xf32>
    %213 = vector.extract_strided_slice %210 {offsets = [0, 128], sizes = [2, 60], strides = [1, 1]} : vector<2x192xf32> to vector<2x60xf32>
    %214 = vector.extract_strided_slice %204 {offsets = [0, 192], sizes = [2, 60], strides = [1, 1]} : vector<2x256xf32> to vector<2x60xf32>
    %215 = math.tanh %214 : vector<2x60xf32>
    %216 = arith.mulf %212, %177 : vector<2x60xf32>
    %217 = arith.mulf %211, %215 : vector<2x60xf32>
    %218 = arith.addf %216, %217 : vector<2x60xf32>
    %219 = math.tanh %218 : vector<2x60xf32>
    %220 = arith.mulf %213, %219 : vector<2x60xf32>
    %221 = vector.extract_strided_slice %5 {offsets = [10, 0], sizes = [2, 128], strides = [1, 1]} : vector<16x128xf32> to vector<2x128xf32>
    %cst_47 = arith.constant dense<0.000000e+00> : vector<2x128xf32>
    %222 = tpu.matmul %198, %6, %cst_47 {dimension_numbers = #tpu.dot_dimension_numbers<[1], [0], [0], [1], [0, 0, 1, 1], [], []>} : vector<2x10xf32>, vector<10x128xf32>, vector<2x128xf32> -> vector<2x128xf32>
    %223 = arith.addf %221, %222 : vector<2x128xf32>
    %224 = vector.extract_strided_slice %223 {offsets = [0, 0], sizes = [2, 96], strides = [1, 1]} : vector<2x128xf32> to vector<2x96xf32>
    %225 = arith.negf %224 : vector<2x96xf32>
    %226 = math.exp %225 : vector<2x96xf32>
    %cst_48 = arith.constant 1.000000e+00 : f32
    %227 = vector.broadcast %cst_48 : f32 to vector<2x96xf32>
    %228 = arith.addf %227, %226 : vector<2x96xf32>
    %229 = arith.divf %227, %228 : vector<2x96xf32>
    %230 = vector.extract_strided_slice %229 {offsets = [0, 0], sizes = [2, 10], strides = [1, 1]} : vector<2x96xf32> to vector<2x10xf32>
    %231 = vector.extract_strided_slice %229 {offsets = [0, 32], sizes = [2, 10], strides = [1, 1]} : vector<2x96xf32> to vector<2x10xf32>
    %232 = vector.extract_strided_slice %229 {offsets = [0, 64], sizes = [2, 10], strides = [1, 1]} : vector<2x96xf32> to vector<2x10xf32>
    %233 = vector.extract_strided_slice %223 {offsets = [0, 96], sizes = [2, 10], strides = [1, 1]} : vector<2x128xf32> to vector<2x10xf32>
    %234 = math.tanh %233 : vector<2x10xf32>
    %235 = arith.mulf %231, %196 : vector<2x10xf32>
    %236 = arith.mulf %230, %234 : vector<2x10xf32>
    %237 = arith.addf %235, %236 : vector<2x10xf32>
    %238 = math.tanh %237 : vector<2x10xf32>
    %239 = arith.mulf %232, %238 : vector<2x10xf32>
    %cst_49 = arith.constant 0.000000e+00 : f32
    %240 = vector.broadcast %cst_49 : f32 to vector<2x10xf32>
    %241 = arith.maximumf %239, %240 : vector<2x10xf32>
    %cst_50 = arith.constant dense<0.000000e+00> : vector<2x256xf32>
    %242 = tpu.matmul %241, %7, %cst_50 {dimension_numbers = #tpu.dot_dimension_numbers<[1], [0], [0], [1], [0, 0, 1, 1], [], []>} : vector<2x10xf32>, vector<10x256xf32>, vector<2x256xf32> -> vector<2x256xf32>
    %cst_51 = arith.constant dense<0.000000e+00> : vector<2x256xf32>
    %243 = tpu.matmul %220, %36, %cst_51 {dimension_numbers = #tpu.dot_dimension_numbers<[1], [0], [0], [1], [0, 0, 1, 1], [], []>} : vector<2x60xf32>, vector<60x256xf32>, vector<2x256xf32> -> vector<2x256xf32>
    %244 = arith.addf %242, %243 : vector<2x256xf32>
    %245 = arith.addf %244, %10 : vector<2x256xf32>
    %246 = vector.extract_strided_slice %245 {offsets = [0, 0], sizes = [2, 192], strides = [1, 1]} : vector<2x256xf32> to vector<2x192xf32>
    %247 = arith.negf %246 : vector<2x192xf32>
    %248 = math.exp %247 : vector<2x192xf32>
    %cst_52 = arith.constant 1.000000e+00 : f32
    %249 = vector.broadcast %cst_52 : f32 to vector<2x192xf32>
    %250 = arith.addf %249, %248 : vector<2x192xf32>
    %251 = arith.divf %249, %250 : vector<2x192xf32>
    %252 = vector.extract_strided_slice %251 {offsets = [0, 0], sizes = [2, 60], strides = [1, 1]} : vector<2x192xf32> to vector<2x60xf32>
    %253 = vector.extract_strided_slice %251 {offsets = [0, 64], sizes = [2, 60], strides = [1, 1]} : vector<2x192xf32> to vector<2x60xf32>
    %254 = vector.extract_strided_slice %251 {offsets = [0, 128], sizes = [2, 60], strides = [1, 1]} : vector<2x192xf32> to vector<2x60xf32>
    %255 = vector.extract_strided_slice %245 {offsets = [0, 192], sizes = [2, 60], strides = [1, 1]} : vector<2x256xf32> to vector<2x60xf32>
    %256 = math.tanh %255 : vector<2x60xf32>
    %257 = arith.mulf %253, %218 : vector<2x60xf32>
    %258 = arith.mulf %252, %256 : vector<2x60xf32>
    %259 = arith.addf %257, %258 : vector<2x60xf32>
    %260 = math.tanh %259 : vector<2x60xf32>
    %261 = arith.mulf %254, %260 : vector<2x60xf32>
    %262 = vector.extract_strided_slice %5 {offsets = [12, 0], sizes = [2, 128], strides = [1, 1]} : vector<16x128xf32> to vector<2x128xf32>
    %cst_53 = arith.constant dense<0.000000e+00> : vector<2x128xf32>
    %263 = tpu.matmul %239, %6, %cst_53 {dimension_numbers = #tpu.dot_dimension_numbers<[1], [0], [0], [1], [0, 0, 1, 1], [], []>} : vector<2x10xf32>, vector<10x128xf32>, vector<2x128xf32> -> vector<2x128xf32>
    %264 = arith.addf %262, %263 : vector<2x128xf32>
    %265 = vector.extract_strided_slice %264 {offsets = [0, 0], sizes = [2, 96], strides = [1, 1]} : vector<2x128xf32> to vector<2x96xf32>
    %266 = arith.negf %265 : vector<2x96xf32>
    %267 = math.exp %266 : vector<2x96xf32>
    %cst_54 = arith.constant 1.000000e+00 : f32
    %268 = vector.broadcast %cst_54 : f32 to vector<2x96xf32>
    %269 = arith.addf %268, %267 : vector<2x96xf32>
    %270 = arith.divf %268, %269 : vector<2x96xf32>
    %271 = vector.extract_strided_slice %270 {offsets = [0, 0], sizes = [2, 10], strides = [1, 1]} : vector<2x96xf32> to vector<2x10xf32>
    %272 = vector.extract_strided_slice %270 {offsets = [0, 32], sizes = [2, 10], strides = [1, 1]} : vector<2x96xf32> to vector<2x10xf32>
    %273 = vector.extract_strided_slice %270 {offsets = [0, 64], sizes = [2, 10], strides = [1, 1]} : vector<2x96xf32> to vector<2x10xf32>
    %274 = vector.extract_strided_slice %264 {offsets = [0, 96], sizes = [2, 10], strides = [1, 1]} : vector<2x128xf32> to vector<2x10xf32>
    %275 = math.tanh %274 : vector<2x10xf32>
    %276 = arith.mulf %272, %237 : vector<2x10xf32>
    %277 = arith.mulf %271, %275 : vector<2x10xf32>
    %278 = arith.addf %276, %277 : vector<2x10xf32>
    %279 = math.tanh %278 : vector<2x10xf32>
    %280 = arith.mulf %273, %279 : vector<2x10xf32>
    %cst_55 = arith.constant 0.000000e+00 : f32
    %281 = vector.broadcast %cst_55 : f32 to vector<2x10xf32>
    %282 = arith.maximumf %280, %281 : vector<2x10xf32>
    %cst_56 = arith.constant dense<0.000000e+00> : vector<2x256xf32>
    %283 = tpu.matmul %282, %7, %cst_56 {dimension_numbers = #tpu.dot_dimension_numbers<[1], [0], [0], [1], [0, 0, 1, 1], [], []>} : vector<2x10xf32>, vector<10x256xf32>, vector<2x256xf32> -> vector<2x256xf32>
    %cst_57 = arith.constant dense<0.000000e+00> : vector<2x256xf32>
    %284 = tpu.matmul %261, %36, %cst_57 {dimension_numbers = #tpu.dot_dimension_numbers<[1], [0], [0], [1], [0, 0, 1, 1], [], []>} : vector<2x60xf32>, vector<60x256xf32>, vector<2x256xf32> -> vector<2x256xf32>
    %285 = arith.addf %283, %284 : vector<2x256xf32>
    %286 = arith.addf %285, %10 : vector<2x256xf32>
    %287 = vector.extract_strided_slice %286 {offsets = [0, 0], sizes = [2, 192], strides = [1, 1]} : vector<2x256xf32> to vector<2x192xf32>
    %288 = arith.negf %287 : vector<2x192xf32>
    %289 = math.exp %288 : vector<2x192xf32>
    %cst_58 = arith.constant 1.000000e+00 : f32
    %290 = vector.broadcast %cst_58 : f32 to vector<2x192xf32>
    %291 = arith.addf %290, %289 : vector<2x192xf32>
    %292 = arith.divf %290, %291 : vector<2x192xf32>
    %293 = vector.extract_strided_slice %292 {offsets = [0, 0], sizes = [2, 60], strides = [1, 1]} : vector<2x192xf32> to vector<2x60xf32>
    %294 = vector.extract_strided_slice %292 {offsets = [0, 64], sizes = [2, 60], strides = [1, 1]} : vector<2x192xf32> to vector<2x60xf32>
    %295 = vector.extract_strided_slice %292 {offsets = [0, 128], sizes = [2, 60], strides = [1, 1]} : vector<2x192xf32> to vector<2x60xf32>
    %296 = vector.extract_strided_slice %286 {offsets = [0, 192], sizes = [2, 60], strides = [1, 1]} : vector<2x256xf32> to vector<2x60xf32>
    %297 = math.tanh %296 : vector<2x60xf32>
    %298 = arith.mulf %294, %259 : vector<2x60xf32>
    %299 = arith.mulf %293, %297 : vector<2x60xf32>
    %300 = arith.addf %298, %299 : vector<2x60xf32>
    %301 = math.tanh %300 : vector<2x60xf32>
    %302 = arith.mulf %295, %301 : vector<2x60xf32>
    %303 = vector.extract_strided_slice %5 {offsets = [14, 0], sizes = [2, 128], strides = [1, 1]} : vector<16x128xf32> to vector<2x128xf32>
    %cst_59 = arith.constant dense<0.000000e+00> : vector<2x128xf32>
    %304 = tpu.matmul %280, %6, %cst_59 {dimension_numbers = #tpu.dot_dimension_numbers<[1], [0], [0], [1], [0, 0, 1, 1], [], []>} : vector<2x10xf32>, vector<10x128xf32>, vector<2x128xf32> -> vector<2x128xf32>
    %305 = arith.addf %303, %304 : vector<2x128xf32>
    %306 = vector.extract_strided_slice %305 {offsets = [0, 0], sizes = [2, 96], strides = [1, 1]} : vector<2x128xf32> to vector<2x96xf32>
    %307 = arith.negf %306 : vector<2x96xf32>
    %308 = math.exp %307 : vector<2x96xf32>
    %cst_60 = arith.constant 1.000000e+00 : f32
    %309 = vector.broadcast %cst_60 : f32 to vector<2x96xf32>
    %310 = arith.addf %309, %308 : vector<2x96xf32>
    %311 = arith.divf %309, %310 : vector<2x96xf32>
    %312 = vector.extract_strided_slice %311 {offsets = [0, 0], sizes = [2, 10], strides = [1, 1]} : vector<2x96xf32> to vector<2x10xf32>
    %313 = vector.extract_strided_slice %311 {offsets = [0, 32], sizes = [2, 10], strides = [1, 1]} : vector<2x96xf32> to vector<2x10xf32>
    %314 = vector.extract_strided_slice %311 {offsets = [0, 64], sizes = [2, 10], strides = [1, 1]} : vector<2x96xf32> to vector<2x10xf32>
    %315 = vector.extract_strided_slice %305 {offsets = [0, 96], sizes = [2, 10], strides = [1, 1]} : vector<2x128xf32> to vector<2x10xf32>
    %316 = math.tanh %315 : vector<2x10xf32>
    %317 = arith.mulf %313, %278 : vector<2x10xf32>
    %318 = arith.mulf %312, %316 : vector<2x10xf32>
    %319 = arith.addf %317, %318 : vector<2x10xf32>
    %320 = math.tanh %319 : vector<2x10xf32>
    %321 = arith.mulf %314, %320 : vector<2x10xf32>
    %cst_61 = arith.constant 0.000000e+00 : f32
    %322 = vector.broadcast %cst_61 : f32 to vector<2x10xf32>
    %323 = arith.maximumf %321, %322 : vector<2x10xf32>
    %cst_62 = arith.constant dense<0.000000e+00> : vector<2x256xf32>
    %324 = tpu.matmul %323, %7, %cst_62 {dimension_numbers = #tpu.dot_dimension_numbers<[1], [0], [0], [1], [0, 0, 1, 1], [], []>} : vector<2x10xf32>, vector<10x256xf32>, vector<2x256xf32> -> vector<2x256xf32>
    %cst_63 = arith.constant dense<0.000000e+00> : vector<2x256xf32>
    %325 = tpu.matmul %302, %36, %cst_63 {dimension_numbers = #tpu.dot_dimension_numbers<[1], [0], [0], [1], [0, 0, 1, 1], [], []>} : vector<2x60xf32>, vector<60x256xf32>, vector<2x256xf32> -> vector<2x256xf32>
    %326 = arith.addf %324, %325 : vector<2x256xf32>
    %327 = arith.addf %326, %10 : vector<2x256xf32>
    %328 = vector.extract_strided_slice %327 {offsets = [0, 0], sizes = [2, 192], strides = [1, 1]} : vector<2x256xf32> to vector<2x192xf32>
    %329 = arith.negf %328 : vector<2x192xf32>
    %330 = math.exp %329 : vector<2x192xf32>
    %cst_64 = arith.constant 1.000000e+00 : f32
    %331 = vector.broadcast %cst_64 : f32 to vector<2x192xf32>
    %332 = arith.addf %331, %330 : vector<2x192xf32>
    %333 = arith.divf %331, %332 : vector<2x192xf32>
    %334 = vector.extract_strided_slice %333 {offsets = [0, 0], sizes = [2, 60], strides = [1, 1]} : vector<2x192xf32> to vector<2x60xf32>
    %335 = vector.extract_strided_slice %333 {offsets = [0, 64], sizes = [2, 60], strides = [1, 1]} : vector<2x192xf32> to vector<2x60xf32>
    %336 = vector.extract_strided_slice %333 {offsets = [0, 128], sizes = [2, 60], strides = [1, 1]} : vector<2x192xf32> to vector<2x60xf32>
    %337 = vector.extract_strided_slice %327 {offsets = [0, 192], sizes = [2, 60], strides = [1, 1]} : vector<2x256xf32> to vector<2x60xf32>
    %338 = math.tanh %337 : vector<2x60xf32>
    %339 = arith.mulf %335, %300 : vector<2x60xf32>
    %340 = arith.mulf %334, %338 : vector<2x60xf32>
    %341 = arith.addf %339, %340 : vector<2x60xf32>
    %342 = math.tanh %341 : vector<2x60xf32>
    %343 = arith.mulf %336, %342 : vector<2x60xf32>
    %cst_65 = arith.constant 0.000000e+00 : f32
    %344 = vector.broadcast %cst_65 : f32 to vector<2x60xf32>
    %345 = arith.maximumf %343, %344 : vector<2x60xf32>
    %c0_66 = arith.constant 0 : index
    %c0_67 = arith.constant 0 : index
    %346 = vector.load %arg7[%c0_66, %c0_67] : memref<60x5xf32, #tpu.memory_space<vmem>>, vector<60x5xf32>
    %cst_68 = arith.constant dense<0.000000e+00> : vector<2x5xf32>
    %347 = tpu.matmul %345, %346, %cst_68 {dimension_numbers = #tpu.dot_dimension_numbers<[1], [0], [0], [1], [0, 0, 1, 1], [], []>} : vector<2x60xf32>, vector<60x5xf32>, vector<2x5xf32> -> vector<2x5xf32>
    %c0_69 = arith.constant 0 : index
    %c0_70 = arith.constant 0 : index
    %348 = vector.load %arg8[%c0_69, %c0_70] : memref<1x5xf32, #tpu.memory_space<vmem>>, vector<1x5xf32>
    %349 = vector.broadcast %348 : vector<1x5xf32> to vector<2x5xf32>
    %350 = arith.addf %347, %349 : vector<2x5xf32>
    %cst_71 = arith.constant dense<0xFF800000> : vector<2xf32>
    %351 = vector.multi_reduction <maximumf>, %350, %cst_71 [1] : vector<2x5xf32> to vector<2xf32>
    %352 = vector.shape_cast %351 : vector<2xf32> to vector<2x1xf32>
    %353 = vector.broadcast %352 : vector<2x1xf32> to vector<2x5xf32>
    %354 = arith.subf %350, %353 : vector<2x5xf32>
    %355 = math.exp %354 : vector<2x5xf32>
    %cst_72 = arith.constant dense<0.000000e+00> : vector<2xf32>
    %356 = vector.multi_reduction <add>, %355, %cst_72 [1] : vector<2x5xf32> to vector<2xf32>
    %357 = vector.shape_cast %356 : vector<2xf32> to vector<2x1xf32>
    %358 = math.log %357 : vector<2x1xf32>
    %359 = vector.broadcast %358 : vector<2x1xf32> to vector<2x5xf32>
    %360 = arith.subf %354, %359 : vector<2x5xf32>
    %c0_73 = arith.constant 0 : index
    %c0_74 = arith.constant 0 : index
    %361 = vector.load %arg9[%c0_73, %c0_74] : memref<2x5xf32, #tpu.memory_space<vmem>>, vector<2x5xf32>
    tpu.vector_store %arg9[%c0_73, %c0_74], %360 {strides = array<i32>} : memref<2x5xf32, #tpu.memory_space<vmem>>, vector<2x5xf32>,
    return
  }
}

</mosaic_0001>

<bundles_post_ra>
// kernel: simple_lstm_forward.1
= control target key start
LH: loop header
LB: loop body
LE: loop exit
PB: predicated region body
PF: predicated region fallthrough
CT: control target
= control target key end

     0   :  { %14 = vsyncpa [#allocation5], 0  ;;  %s4209_s0 = inlined_call_operand.vmem [shape: f32[16,6], index: 0, kind: input, shape index: {}]   ;;  %s4210_s1 = inlined_call_operand.hbm [shape: f32[6,128], index: 1, kind: input, shape index: {}]   ;;  %s4211_s2 = inlined_call_operand.hbm [shape: f32[1,128], index: 2, kind: input, shape index: {}]   ;;  %s4212_s3 = inlined_call_operand.hbm [shape: f32[10,128], index: 3, kind: input, shape index: {}]   ;;  %s4213_s4 = inlined_call_operand.hbm [shape: f32[10,256], index: 4, kind: input, shape index: {}]   ;;  %s4214_s5 = inlined_call_operand.vmem [shape: f32[60,256], index: 5, kind: input, shape index: {}]   ;;  %s4215_s6 = inlined_call_operand.vmem [shape: f32[1,256], index: 6, kind: input, shape index: {}]   ;;  %s4216_s7 = inlined_call_operand.vmem [shape: f32[60,5], index: 7, kind: input, shape index: {}]   ;;  %s4217_s8 = inlined_call_operand.hbm [shape: f32[1,5], index: 8, kind: input, shape index: {}]   ;;  %s4218_s9 = inlined_call_operand.hbm [shape: f32[2,5], index: 9, kind: output, shape index: {}]  }
   0x1   :  { %15 = vsyncpa [#allocation8], 0 }
   0x2   :  { %16 = vsyncpa [#allocation11], 0 }
   0x3   :  { %17 = vsyncpa [#allocation6], 0  ;;  %s3551_s30 = smov [#allocation7]   ;;  %s3552_s11 = smov [#allocation10]  }
   0x4   :  { %s36_s10 = sshll.u32 %s3551_s30, 4  ;;  %s57_s12 = sshll.u32 %s3552_s11, 4  ;;  %s37_s10 = int_to_ptr.vmem [resolvable:$true] %s36_s10  ;;  %s3617_s12 = int_to_ptr.vmem [resolvable:$true] %s57_s12 }
   0x5   :  { %s3409_s15 = scalar_lea.hbm %s4211_s2, 16 }
   0x6   :  { %p3410_p0 = scmp.ne.s32.totalorder %s4211_s2, %s3409_s15  ;;  %p3413_p1 = scmp.lt.u32.totalorder %s3409_s15, %s4211_s2 }
   0x8   :  { %p3415_p2 = pnand %p3413_p1, %p3410_p0 }
   0xa   :  { %3418 = shalt.err (!%p3415_p2)
}
   0xb   :  { %s3419_s20 = scalar_lea.vmem %s37_s10, 16  ;;  %s3423_s21 = scalar_lea.vmem %s37_s10, 32 }
   0xc   :  { %p3420_p3 = scmp.ne.s32.totalorder %s37_s10, %s3419_s20  ;;  %p3424_p4 = scmp.lt.s32.totalorder %s37_s10, %s37_s10 }
   0xd   :  { %p3425_p5 = scmp.lt.s32.totalorder %s3423_s21, %s3419_s20 }
   0xf   :  { %p3426_p6 = por %p3425_p5, %p3424_p4 }
  0x11   :  { %p3427_p7 = pnand %p3426_p6, %p3420_p3 }
  0x13   :  { %3430 = shalt.err (!%p3427_p7)
}
  0x14   :  { %39 = dma.hbm_to_vmem [thread:$0]  %s4211_s2, 16, %s37_s10, [#allocation8]  }
  0x15   :  { %s3431_s26 = scalar_lea.hbm %s4213_s4, 512 }
  0x16   :  { %p3432_p8 = scmp.ne.s32.totalorder %s4213_s4, %s3431_s26  ;;  %p3435_p9 = scmp.lt.u32.totalorder %s3431_s26, %s4213_s4 }
  0x18   :  { %p3437_p10 = pnand %p3435_p9, %p3432_p8 }
  0x1a   :  { %3440 = shalt.err (!%p3437_p10)
}
  0x1b   :  { %s3441_s11 = scalar_lea.vmem %s3617_s12, 512  ;;  %p3446_p12 = scmp.lt.s32.totalorder %s3617_s12, %s3617_s12 }
  0x1c   :  { %p3442_p11 = scmp.ne.s32.totalorder %s3617_s12, %s3441_s11  ;;  %p3447_p13 = scmp.lt.s32.totalorder %s3441_s11, %s3441_s11 }
  0x1e   :  { %p3448_p0 = por %p3447_p13, %p3446_p12 }
  0x20   :  { %p3449_p1 = pnand %p3448_p0, %p3442_p11 }
  0x22   :  { %3452 = shalt.err (!%p3449_p1)
}
  0x23   :  { %s3553_s2 = smov 256   ;;  %s3554_s10 = smov 16  }
  0x24   :  { %63 = dma.hbm_to_vmem [thread:$0]  %s4213_s4, 512, %s3617_s12, [#allocation11], %s3553_s2, %s3553_s2, %s3554_s10  }
  0x25   :  { %s3555_s15 = smov [#allocation4]   ;;  %s3556_s17 = smov [#allocation9]  }
  0x26   :  { %s26_s16 = sshll.u32 %s3555_s15, 4  ;;  %s45_s18 = sshll.u32 %s3556_s17, 4  ;;  %s27_s16 = int_to_ptr.vmem [resolvable:$true] %s26_s16  ;;  %s3648_s18 = int_to_ptr.vmem [resolvable:$true] %s45_s18 }
  0x27   :  { %s3453_s21 = scalar_lea.hbm %s4210_s1, 128 }
  0x28   :  { %p3454_p2 = scmp.ne.s32.totalorder %s4210_s1, %s3453_s21  ;;  %p3457_p3 = scmp.lt.u32.totalorder %s3453_s21, %s4210_s1 }
  0x2a   :  { %p3459_p4 = pnand %p3457_p3, %p3454_p2 }
  0x2c   :  { %3462 = shalt.err (!%p3459_p4)
}
  0x2d   :  { %s3463_s4 = scalar_lea.vmem %s27_s16, 128  ;;  %p3468_p6 = scmp.lt.s32.totalorder %s27_s16, %s27_s16 }
  0x2e   :  { %p3464_p5 = scmp.ne.s32.totalorder %s27_s16, %s3463_s4  ;;  %p3469_p7 = scmp.lt.s32.totalorder %s3463_s4, %s3463_s4 }
  0x30   :  { %p3470_p8 = por %p3469_p7, %p3468_p6 }
  0x32   :  { %p3471_p9 = pnand %p3470_p8, %p3464_p5 }
  0x34   :  { %3474 = shalt.err (!%p3471_p9)
}
  0x35   :  { %29 = dma.hbm_to_vmem [thread:$0]  %s4210_s1, 128, %s27_s16, [#allocation5]  }
  0x36   :  { %s3475_s29 = scalar_lea.hbm %s4212_s3, 256 }
  0x37   :  { %p3476_p10 = scmp.ne.s32.totalorder %s4212_s3, %s3475_s29  ;;  %p3479_p11 = scmp.lt.u32.totalorder %s3475_s29, %s4212_s3 }
  0x39   :  { %p3481_p12 = pnand %p3479_p11, %p3476_p10 }
  0x3b   :  { %3484 = shalt.err (!%p3481_p12)
}
  0x3c   :  { %s3485_s13 = scalar_lea.vmem %s3648_s18, 256  ;;  %p3490_p0 = scmp.lt.s32.totalorder %s3648_s18, %s3648_s18 }
  0x3d   :  { %p3486_p13 = scmp.ne.s32.totalorder %s3648_s18, %s3485_s13  ;;  %p3491_p1 = scmp.lt.s32.totalorder %s3485_s13, %s3485_s13 }
  0x3f   :  { %p3492_p2 = por %p3491_p1, %p3490_p0 }
  0x41   :  { %p3493_p3 = pnand %p3492_p2, %p3486_p13 }
  0x43   :  { %3496 = shalt.err (!%p3493_p3)
}
  0x44   :  { %s3557_s1 = smov 128   ;;  %s3558_s14 = smov 8  }
  0x45   :  { %51 = dma.hbm_to_vmem [thread:$0]  %s4212_s3, 256, %s3648_s18, [#allocation8], %s3557_s1, %s3557_s1, %s3558_s14  }
  0x46   :  { %s3559_s17 = smov [#allocation12]   ;;  %s3497_s22 = scalar_lea.hbm %s4217_s8, 16 }
  0x47   :  { %s74_s19 = sshll.u32 %s3559_s17, 4  ;;  %p3498_p4 = scmp.ne.s32.totalorder %s4217_s8, %s3497_s22  ;;  %s75_s19 = int_to_ptr.vmem [resolvable:$true] %s74_s19 }
  0x48   :  { %p3501_p5 = scmp.lt.u32.totalorder %s3497_s22, %s4217_s8 }
  0x4a   :  { %p3503_p6 = pnand %p3501_p5, %p3498_p4 }
  0x4c   :  { %3506 = shalt.err (!%p3503_p6)
}
  0x4d   :  { %s3507_s12 = scalar_lea.vmem %s75_s19, 16  ;;  %s3511_s3 = scalar_lea.vmem %s75_s19, 32 }
  0x4e   :  { %p3508_p7 = scmp.ne.s32.totalorder %s75_s19, %s3507_s12  ;;  %p3512_p8 = scmp.lt.s32.totalorder %s75_s19, %s75_s19 }
  0x4f   :  { %p3513_p9 = scmp.lt.s32.totalorder %s3511_s3, %s3507_s12 }
  0x51   :  { %p3514_p10 = por %p3513_p9, %p3512_p8 }
  0x53   :  { %p3515_p11 = pnand %p3514_p10, %p3508_p7 }
  0x55   :  { %3518 = shalt.err (!%p3515_p11)
}
  0x56   :  { %77 = dma.hbm_to_vmem [thread:$0]  %s4217_s8, 16, %s75_s19, [#allocation11]  }
  0x57   :  { %3541 = dma.done.wait [#allocation5], 128  }
  0x58   :  { %3542 = vsyncadd [#allocation5], 4294967168 }
  0x59   :  { %3543 = dma.done.wait [#allocation8], 272  }
  0x5a   :  { %3544 = vsyncadd [#allocation8], 4294967024 }
  0x5b   :  { %3545 = dma.done.wait [#allocation11], 528  }
  0x5c   :  { %3546 = vsyncadd [#allocation11], 4294966768  ;;  %v125_v0 = vld [vmem:[%s4214_s5] sm:$0xff]  ;;  %v127_v1 = vld [vmem:[%s4214_s5 + $0x8] sm:$0xff] }
  0x5d   :  { %v129_v2 = vld [vmem:[%s4214_s5 + $0x10] sm:$0xff]  ;;  %126 = vst [vmem:[#allocation2] sm:$0xff] %v125_v0  ;;  %128 = vst [vmem:[#allocation2 + $0x8] sm:$0xff] %v127_v1  ;;  %v131_v3 = vld [vmem:[%s4214_s5 + $0x18] sm:$0xff] }
  0x5e   :  { %130 = vst [vmem:[#allocation2 + $0x10] sm:$0xff] %v129_v2  ;;  %v133_v4 = vld [vmem:[%s4214_s5 + $0x20] sm:$0xff]  ;;  %v135_v5 = vld [vmem:[%s4214_s5 + $0x28] sm:$0xff]  ;;  %132 = vst [vmem:[#allocation2 + $0x18] sm:$0xff] %v131_v3 }
  0x5f   :  { %134 = vst [vmem:[#allocation2 + $0x20] sm:$0xff] %v133_v4  ;;  %136 = vst [vmem:[#allocation2 + $0x28] sm:$0xff] %v135_v5  ;;  %v137_v6 = vld [vmem:[%s4214_s5 + $0x30] sm:$0xff]  ;;  %v139_v7 = vld [vmem:[%s4214_s5 + $0x38] sm:$0xff] }
  0x60   :  { %v141_v8 = vld [vmem:[%s4214_s5 + $0x40] sm:$0xff]  ;;  %138 = vst [vmem:[#allocation2 + $0x30] sm:$0xff] %v137_v6  ;;  %140 = vst [vmem:[#allocation2 + $0x38] sm:$0xff] %v139_v7  ;;  %v143_v9 = vld [vmem:[%s4214_s5 + $0x48] sm:$0xff] }
  0x61   :  { %142 = vst [vmem:[#allocation2 + $0x40] sm:$0xff] %v141_v8  ;;  %v145_v10 = vld [vmem:[%s4214_s5 + $0x50] sm:$0xff]  ;;  %v147_v11 = vld [vmem:[%s4214_s5 + $0x58] sm:$0xff]  ;;  %144 = vst [vmem:[#allocation2 + $0x48] sm:$0xff] %v143_v9 }
  0x62   :  { %146 = vst [vmem:[#allocation2 + $0x50] sm:$0xff] %v145_v10  ;;  %148 = vst [vmem:[#allocation2 + $0x58] sm:$0xff] %v147_v11  ;;  %v149_v12 = vld [vmem:[%s4214_s5 + $0x60] sm:$0xff]  ;;  %v151_v13 = vld [vmem:[%s4214_s5 + $0x68] sm:$0xff] }
  0x63   :  { %v153_v14 = vld [vmem:[%s4214_s5 + $0x70] sm:$0xff]  ;;  %150 = vst [vmem:[#allocation2 + $0x60] sm:$0xff] %v149_v12  ;;  %152 = vst [vmem:[#allocation2 + $0x68] sm:$0xff] %v151_v13  ;;  %v155_v15 = vld [vmem:[%s4214_s5 + $0x78] sm:$0xff] }
  0x64   :  { %154 = vst [vmem:[#allocation2 + $0x70] sm:$0xff] %v153_v14  ;;  %156 = vst [vmem:[#allocation2 + $0x78] sm:$0xff] %v155_v15 }
  0x65   :  { %164 = vsyncadd [#allocation3], 2048  ;;  %v167_v16 = vld [vmem:[#allocation4] sm:$0x3f]  ;;  %vm182_vm0 = vcmask 1045504   ;;  %v269_v18 = vlaneseq  ;;  %vm175_vm1 = vcmask 48128  }
  0x66   :  { %v165_v17 = vld [vmem:[%s4209_s0] sm:$0xff]  ;;  %2896 = vmatprep.subr.msk.mxu0 %vm182_vm0, %v167_v16  ;;  %v265_v21 = vld [vmem:[#allocation10 + $0x10] sm:$0x3]  ;;  %vm279_vm2 = vcmask 80896   ;;  %v266_v22 = vld [vmem:[#allocation10 + $0x18] sm:$0x3] }
  0x67   :  { %v263_v19 = vld [vmem:[#allocation10] sm:$0xff]  ;;  %v264_v20 = vld [vmem:[#allocation10 + $0x8] sm:$0xff]  ;;  %2897 = vmatpush3.msk.msra.mxu0 %vm182_vm0, %v167_v16  ;;  %2898 = vmatprep.mubr.msk.f32.mxu0 %vm175_vm1, %v165_v17  ;;  %v270_v24 = vshrl.u32 %v269_v18, 7  ;;  %v3560_v25 = vmov 0.0|0.0   ;;  %v261_v27 = vld [vmem:[#allocation9] sm:$0xff]  ;;  %vm283_vm3 = vcmask 1041408  }
  0x68   :  { %v267_v23 = vld [vmem:[%s4215_s6] sm:$0x3]  ;;  %2976 = vmatprep.subr.bf16.mxu1 %v3560_v25  ;;  %v166_v26 = vld [vmem:[%s4209_s0 + $0x8] sm:$0xff]  ;;  %v262_v28 = vld [vmem:[#allocation9 + $0x8] sm:$0x3]  ;;  %vm3561_vm4 = vmmov 1  }
  0x69   :  { %v271_v29 = vsub.s32 0, %v270_v24  ;;  %v275_v30 = vsub.s32 1, %v270_v24  ;;  %2899 = vmatmul.mubr.msk.f32.vlgmr.msra.gmra.mrb[0].mxu0 %vm175_vm1, %v166_v26  ;;  %v3751_v31 = vpack.c.bf16 %v262_v28, %v261_v27  ;;  %vm3754_vm5 = vmpackc.low %vm283_vm3, %vm3561_vm4  ;;  %vm3562_vm6 = vmmov 0   ;;  %v2766_v36 = vld [vmem:[#allocation7] ss:$0 sm:$0xff]  ;;  %s3564_s0 = smov 32  }
  0x6a   :  { %v3563_v35 = vmov 0.0  }
  0x6b   :  { %v3758_v33 = vrot.slane %v267_v23, %v271_v29  ;;  %v3760_v34 = vrot.slane %v267_v23, %v275_v30  ;;  %2979 = vmatpush3.bf16.msk.msra.mxu1 %vm3754_vm5, %v3751_v31  ;;  %2905 = vmatprep.mubr.msk.f32.mxu1 %vm3562_vm6, %v3563_v35 }
  0x6e   :  { %2906 = vmatmul.mubr.f32.vlgmr.msra.gmra.mrb[0].mxu1 %v3563_v35 }
 0x13c   :  { %v2900_v37 = vpop.f32.mrb[0].mxu0 }
 0x13d   :  { %v3768_v38 = vadd.f32 %v2900_v37, %v2766_v36  ;;  %v252_v39 = vpop.f32.mrb[1].mxu0 }
 0x13e   :  { %v3770_v40 = vadd.f32 %v2766_v36, %v252_v39 }
 0x141   :  { %v353_v41 = vpop.f32.mrb[0].mxu1 }
 0x142   :  { %v357_v42 = vadd.f32 %v353_v41, %v3770_v40  ;;  %v2907_v43 = vpop.f32.mrb[1].mxu1 }
 0x144   :  { %3245 = vtanh.f32 %v357_v42  ;;  %v2771_v45 = vmul.f32 -1.442695, %v357_v42 }
 0x146   :  { %3247 = vpow2.f32 %v2771_v45 }
 0x14e   :  { %v3246_v44 = vpop.eup %3245 }
 0x14f   :  { %367 = vrot.lane.b32.xlu0 %v3246_v44, %s3564_s0 }
 0x150   :  { %v3248_v46 = vpop.eup %3247 }
 0x151   :  { %v361_v47 = vadd.f32 1.0, %v3248_v46 }
 0x153   :  { %3249 = vrcp.f32 %v361_v47 }
 0x15d   :  { %v3250_v48 = vpop.eup %3249 }
 0x15e   :  { %v365_v51 = vmul.f32 0.0, %v3250_v48 }
 0x1c1   :  { %v368_v49 = vpop.permute.xlu0 %367 }
 0x1c2   :  { %v370_v50 = vmul.f32 %v3250_v48, %v368_v49 }
 0x1c4   :  { %372 = vrot.lane.b32.xlu0 %v370_v50, %s3564_s0 }
 0x236   :  { %v373_v52 = vpop.permute.xlu0 %372 }
 0x237   :  { %v3775_v53 = vadd.f32 %v373_v52, %v365_v51 }
 0x239   :  { %3251 = vtanh.f32 %v3775_v53 }
 0x243   :  { %v3252_v54 = vpop.eup %3251 }
 0x244   :  { %378 = vrot.lane.b32.xlu1 %v3252_v54, %s3564_s0 }
 0x2b6   :  { %v379_v55 = vpop.permute.xlu1 %378 }
 0x2b7   :  { %v381_v56 = vmul.f32 %v3250_v48, %v379_v55 }
 0x2b9   :  { %v382_v57 = vmax.f32 %v381_v56, 0.0 }
 0x2ba   :  { %3547 = dma.done.wait [#allocation3], 2048 }
 0x2bb   :  { %3548 = vsyncadd [#allocation3], 4294965248  ;;  %v3779_v58 = vpack.c.bf16 %v266_v22, %v264_v20  ;;  %v3781_v59 = vpack.c.bf16 %v265_v21, %v263_v19  ;;  %559 = vmatprep.mubr.f32.mxu1 %v3563_v35  ;;  %477 = vmatprep.mubr.f32.mxu0 %v3563_v35  ;;  %s3565_s6 = smov 64   ;;  %v388_v60 = vld [vmem:[#allocation2 + $0x8] sm:$0xff]  ;;  %v390_v61 = vld [vmem:[#allocation2 + $0x18] sm:$0xff]  ;;  %vm406_vm7 = vcmask 1043456  }
 0x2bc   :  { %485 = vrot.lane.b32.xlu0 %v382_v57, %s3565_s6  ;;  %v387_v62 = vld [vmem:[#allocation2] sm:$0xff]  ;;  %v3794_v63 = vpack.c.bf16 %v390_v61, %v388_v60  ;;  %v389_v0 = vld [vmem:[#allocation2 + $0x10] sm:$0xff]  ;;  %v392_v1 = vld [vmem:[#allocation2 + $0x28] sm:$0xff]  ;;  %v685_v48 = vrot.slane %v3775_v53, 6  ;;  %vm403_vm9 = vcmask 490496   ;;  %vm2721_vm10 = vcmask 33792  }
 0x2bd   :  { %3000 = vmatprep.subr.msk.bf16.mxu1 %vm3754_vm5, %v3779_v58  ;;  %v394_v2 = vld [vmem:[#allocation2 + $0x38] sm:$0xff]  ;;  %v3796_v3 = vpack.c.bf16 %v389_v0, %v387_v62  ;;  %v391_v5 = vld [vmem:[#allocation2 + $0x20] sm:$0xff]  ;;  %v393_v6 = vld [vmem:[#allocation2 + $0x30] sm:$0xff] }
 0x2be   :  { %3003 = vmatpush1.bf16.msk.msra.mxu1 %vm3754_vm5, %v3781_v59  ;;  %v3798_v4 = vpack.c.bf16 %v394_v2, %v392_v1  ;;  %v396_v7 = vld [vmem:[#allocation2 + $0x48] sm:$0xff]  ;;  %2981 = vmatprep.subr.bf16.mxu0 %v3794_v63  ;;  %v398_v8 = vld [vmem:[#allocation2 + $0x58] sm:$0xff]  ;;  %v3802_v9 = vpack.c.bf16 %v393_v6, %v391_v5  ;;  %v395_v11 = vld [vmem:[#allocation2 + $0x40] sm:$0xff] }
 0x2bf   :  { %3004 = vmatprep.subr.bf16.mxu1 %v3560_v25  ;;  %2983 = vmatpush1.bf16.msra.mxu0 %v3796_v3  ;;  %v3805_v10 = vpack.c.bf16 %v398_v8, %v396_v7  ;;  %v397_v12 = vld [vmem:[#allocation2 + $0x50] sm:$0xff]  ;;  %v400_v13 = vld [vmem:[#allocation2 + $0x68] sm:$0xff]  ;;  %v402_v14 = vld [vmem:[#allocation2 + $0x78] sm:$0xf] }
 0x2c0   :  { %599 = vrot.lane.b32.xlu0 %v381_v56, %s3565_s6  ;;  %2985 = vmatprep.subr.bf16.mxu0 %v3798_v4  ;;  %v3808_v15 = vpack.c.bf16 %v397_v12, %v395_v11  ;;  %v3811_v16 = vpack.c.bf16 %v402_v14, %v400_v13  ;;  %v399_v17 = vld [vmem:[#allocation2 + $0x60] sm:$0xff]  ;;  %v401_v18 = vld [vmem:[#allocation2 + $0x70] sm:$0xf]  ;;  %vm3814_vm8 = vmpackc.low %vm406_vm7, %vm3561_vm4 }
 0x2c1   :  { %v3819_v20 = vpack.c.bf16 %v401_v18, %v399_v17 }
 0x2c3   :  { %2987 = vmatpush1.bf16.msra.mxu0 %v3802_v9 }
 0x2c4   :  { %2989 = vmatprep.subr.bf16.mxu0 %v3805_v10 }
 0x2c7   :  { %2991 = vmatpush1.bf16.msra.mxu0 %v3808_v15 }
 0x2c8   :  { %2994 = vmatprep.subr.msk.bf16.mxu0 %vm3814_vm8, %v3811_v16 }
 0x2cb   :  { %2997 = vmatpush1.bf16.msk.msra.mxu0 %vm3814_vm8, %v3819_v20 }
 0x2cc   :  { %3032 = vmatprep.subr.bf16.mxu0 %v3560_v25 }
 0x2ce   :  { %478 = vmatmul.mubr.f32.vlgmr.msra.gmra.mrb[2].mxu0 %v3563_v35 }
 0x2cf   :  { %3035 = vmatpush3.bf16.msk.msra.mxu0 %vm3754_vm5, %v3751_v31  ;;  %2919 = vmatprep.mubr.msk.f32.mxu0 %vm3562_vm6, %v3563_v35 }
 0x2d0   :  { %3037 = vmatprep.subr.bf16.mxu0 %v3794_v63 }
 0x32e   :  { %v486_v21 = vpop.permute.xlu0 %485 }
 0x32f   :  { %2776 = vmatmul.mubr.msk.f32.vlgmr.msra.gmra.mrb[2].mxu1 %vm279_vm2, %v486_v21 }
 0x330   :  { %3007 = vmatpush3.bf16.msk.msra.mxu1 %vm3754_vm5, %v3751_v31  ;;  %2912 = vmatprep.mubr.msk.f32.mxu1 %vm3562_vm6, %v3563_v35 }
 0x331   :  { %3009 = vmatprep.subr.bf16.mxu1 %v3794_v63 }
 0x332   :  { %v600_v22 = vpop.permute.xlu0 %599 }
 0x333   :  { %2913 = vmatmul.mubr.msk.f32.vlgmr.msra.gmra.mrb[4].mxu1 %vm279_vm2, %v600_v22 }
 0x334   :  { %3011 = vmatpush1.bf16.msra.mxu1 %v3796_v3  ;;  %772 = vmatprep.mubr.f32.mxu1 %v3563_v35 }
 0x335   :  { %3013 = vmatprep.subr.bf16.mxu1 %v3798_v4 }
 0x338   :  { %3015 = vmatpush1.bf16.msra.mxu1 %v3802_v9 }
 0x339   :  { %3017 = vmatprep.subr.bf16.mxu1 %v3805_v10 }
 0x33c   :  { %3019 = vmatpush1.bf16.msra.mxu1 %v3808_v15 }
 0x33d   :  { %3022 = vmatprep.subr.msk.bf16.mxu1 %vm3814_vm8, %v3811_v16 }
 0x340   :  { %3025 = vmatpush1.bf16.msk.msra.mxu1 %vm3814_vm8, %v3819_v20 }
 0x341   :  { %3028 = vmatprep.subr.msk.bf16.mxu1 %vm3754_vm5, %v3779_v58 }
 0x3a1   :  { %v479_v23 = vpop.f32.mrb[2].mxu0 }
 0x3a2   :  { %v481_v24 = vpop.f32.mrb[3].mxu0 }
 0x402   :  { %v561_v26 = vpop.f32.mrb[2].mxu1 }
 0x403   :  { %v562_v27 = vadd.f32 %v561_v26, %v479_v23  ;;  %v563_v28 = vpop.f32.mrb[3].mxu1 }
 0x404   :  { %v564_v29 = vadd.f32 %v563_v28, %v481_v24 }
 0x405   :  { %v566_v56 = vadd.f32 %v562_v27, %v3758_v33 }
 0x406   :  { %v669_v30 = vpop.f32.mrb[4].mxu1  ;;  %v567_v52 = vadd.f32 %v564_v29, %v3760_v34 }
 0x407   :  { %v674_v36 = vrot.slane %v669_v30, 6  ;;  %v2914_v37 = vpop.f32.mrb[5].mxu1  ;;  %v2777_v57 = vmul.f32 -1.442695, %v566_v56 }
 0x408   :  { %v2778_v13 = vmul.f32 -1.442695, %v567_v52 }
 0x409   :  { %v676_v39 = vadd.f32 %v674_v36, %v3770_v40 }
 0x40b   :  { %3253 = vtanh.f32 %v676_v39  ;;  %v2781_v42 = vmul.f32 -1.442695, %v676_v39 }
 0x40d   :  { %3255 = vpow2.f32 %v2781_v42 }
 0x415   :  { %v3254_v41 = vpop.eup %3253 }
 0x416   :  { %689 = vrot.lane.b32.xlu1 %v3254_v41, %s3564_s0 }
 0x417   :  { %v3256_v43 = vpop.eup %3255 }
 0x418   :  { %v680_v44 = vadd.f32 1.0, %v3256_v43 }
 0x41a   :  { %3257 = vrcp.f32 %v680_v44 }
 0x424   :  { %v3258_v45 = vpop.eup %3257 }
 0x425   :  { %v687_v49 = vmul.f32 %v3258_v45, %v685_v48 }
 0x488   :  { %v690_v46 = vpop.permute.xlu1 %689 }
 0x489   :  { %v692_v47 = vmul.f32 %v3258_v45, %v690_v46 }
 0x48b   :  { %694 = vrot.lane.b32.xlu1 %v692_v47, %s3564_s0 }
 0x4fd   :  { %v695_v50 = vpop.permute.xlu1 %694 }
 0x4fe   :  { %v3862_v51 = vadd.f32 %v695_v50, %v687_v49 }
 0x500   :  { %3259 = vtanh.f32 %v3862_v51 }
 0x501   :  { %3261 = vtanh.f32 %v567_v52 }
 0x502   :  { %3263 = vpow2.f32 %v2777_v57 }
 0x50a   :  { %v3260_v54 = vpop.eup %3259 }
 0x50b   :  { %700 = vrot.lane.b32.xlu0 %v3260_v54, %s3564_s0  ;;  %v3262_v55 = vpop.eup %3261 }
 0x50c   :  { %v3264_v53 = vpop.eup %3263 }
 0x50d   :  { %v574_v60 = vadd.f32 1.0, %v3264_v53 }
 0x50f   :  { %583 = vrot.lane.b32.xlu0 %v3262_v55, %s3565_s6  ;;  %3265 = vrcp.f32 %v574_v60 }
 0x519   :  { %v3266_v2 = vpop.eup %3265 }
 0x51a   :  { %v581_v7 = vmul.f32 0.0, %v3266_v2 }
 0x57d   :  { %v701_v61 = vpop.permute.xlu0 %700 }
 0x57e   :  { %v703_v62 = vmul.f32 %v3258_v45, %v701_v61  ;;  %v976_v45 = vrot.slane %v3862_v51, 6 }
 0x580   :  { %v889_v0 = vrot.slane %v703_v62, 2  ;;  %v704_v28 = vmax.f32 %v703_v62, 0.0 }
 0x581   :  { %v584_v1 = vpop.permute.xlu0 %583 }
 0x582   :  { %890 = vrot.lane.b32.xlu1 %v889_v0, %s3565_s6  ;;  %v586_v5 = vmul.f32 %v3266_v2, %v584_v1  ;;  %v780_v30 = vrot.slane %v704_v28, 2 }
 0x586   :  { %588 = vrot.lane.b32.xlu1 %v586_v5, %s3565_s6 }
 0x5f4   :  { %v891_v6 = vpop.permute.xlu1 %890 }
 0x5f5   :  { %2920 = vmatmul.mubr.msk.f32.vlgmr.msra.gmra.mrb[4].mxu0 %vm279_vm2, %v891_v6 }
 0x5f6   :  { %3039 = vmatpush1.bf16.msra.mxu0 %v3796_v3  ;;  %1063 = vmatprep.mubr.f32.mxu0 %v3563_v35 }
 0x5f7   :  { %3041 = vmatprep.subr.bf16.mxu0 %v3798_v4 }
 0x5f8   :  { %v589_v8 = vpop.permute.xlu1 %588 }
 0x5f9   :  { %v3875_v11 = vadd.f32 %v589_v8, %v581_v7 }
 0x5fa   :  { %3043 = vmatpush1.bf16.msra.mxu0 %v3802_v9 }
 0x5fb   :  { %3267 = vtanh.f32 %v3875_v11  ;;  %3045 = vmatprep.subr.bf16.mxu0 %v3805_v10 }
 0x5fc   :  { %3269 = vpow2.f32 %v2778_v13 }
 0x5fe   :  { %3047 = vmatpush1.bf16.msra.mxu0 %v3808_v15 }
 0x5ff   :  { %3050 = vmatprep.subr.msk.bf16.mxu0 %vm3814_vm8, %v3811_v16 }
 0x602   :  { %3053 = vmatpush1.bf16.msk.msra.mxu0 %vm3814_vm8, %v3819_v20 }
 0x603   :  { %3056 = vmatprep.subr.msk.bf16.mxu0 %vm3754_vm5, %v3779_v58 }
 0x605   :  { %v3268_v12 = vpop.eup %3267 }
 0x606   :  { %594 = vrot.lane.b32.xlu1 %v3268_v12, %s3565_s6  ;;  %v3270_v14 = vpop.eup %3269 }
 0x607   :  { %v575_v17 = vadd.f32 1.0, %v3270_v14 }
 0x609   :  { %3271 = vrcp.f32 %v575_v17 }
 0x613   :  { %v3272_v18 = vpop.eup %3271 }
 0x678   :  { %v595_v21 = vpop.permute.xlu1 %594 }
 0x679   :  { %v597_v22 = vmul.f32 %v3272_v18, %v595_v21 }
 0x67b   :  { %2784 = vmatmul.mubr.msk.f32.vlgmr.msra.gmra.mrb[6].mxu1 %vm403_vm9, %v597_v22 }
 0x67c   :  { %3031 = vmatpush1.bf16.msk.msra.mxu1 %vm3754_vm5, %v3781_v59  ;;  %849 = vmatprep.mubr.f32.mxu1 %v3563_v35 }
 0x67d   :  { %3060 = vmatprep.subr.bf16.mxu1 %v3560_v25 }
 0x6c8   :  { %v960_v23 = vpop.f32.mrb[4].mxu0 }
 0x6c9   :  { %v965_v24 = vrot.slane %v960_v23, 4  ;;  %v2921_v26 = vpop.f32.mrb[5].mxu0 }
 0x6cb   :  { %v967_v27 = vadd.f32 %v965_v24, %v3770_v40 }
 0x6cd   :  { %3273 = vtanh.f32 %v967_v27  ;;  %v2792_v36 = vmul.f32 -1.442695, %v967_v27 }
 0x6cf   :  { %3275 = vpow2.f32 %v2792_v36 }
 0x6d7   :  { %v3274_v29 = vpop.eup %3273 }
 0x6d8   :  { %980 = vrot.lane.b32.xlu0 %v3274_v29, %s3564_s0 }
 0x6d9   :  { %v3276_v37 = vpop.eup %3275 }
 0x6da   :  { %v971_v39 = vadd.f32 1.0, %v3276_v37 }
 0x6dc   :  { %781 = vrot.lane.b32.xlu0 %v780_v30, %s3565_s6  ;;  %3277 = vrcp.f32 %v971_v39 }
 0x6e6   :  { %v3278_v41 = vpop.eup %3277 }
 0x6e7   :  { %v978_v46 = vmul.f32 %v3278_v41, %v976_v45 }
 0x74a   :  { %v981_v42 = vpop.permute.xlu0 %980 }
 0x74b   :  { %v983_v43 = vmul.f32 %v3278_v41, %v981_v42 }
 0x74d   :  { %985 = vrot.lane.b32.xlu1 %v983_v43, %s3564_s0 }
 0x74e   :  { %v782_v44 = vpop.permute.xlu0 %781 }
 0x74f   :  { %2787 = vmatmul.mubr.msk.f32.vlgmr.msra.gmra.mrb[6].mxu1 %vm279_vm2, %v782_v44 }
 0x750   :  { %3063 = vmatpush3.bf16.msk.msra.mxu1 %vm3754_vm5, %v3751_v31  ;;  %2926 = vmatprep.mubr.msk.f32.mxu1 %vm3562_vm6, %v3563_v35 }
 0x751   :  { %3065 = vmatprep.subr.bf16.mxu1 %v3794_v63 }
 0x7bf   :  { %v986_v47 = vpop.permute.xlu1 %985 }
 0x7c0   :  { %v3909_v48 = vadd.f32 %v986_v47, %v978_v46 }
 0x7c2   :  { %3279 = vtanh.f32 %v3909_v48  ;;  %v1267_v45 = vrot.slane %v3909_v48, 6 }
 0x7cc   :  { %v3280_v49 = vpop.eup %3279 }
 0x7cd   :  { %991 = vrot.lane.b32.xlu0 %v3280_v49, %s3564_s0 }
 0x822   :  { %v851_v50 = vpop.f32.mrb[6].mxu1 }
 0x823   :  { %v853_v52 = vpop.f32.mrb[7].mxu1  ;;  %v856_v53 = vadd.f32 %v851_v50, %v3758_v33 }
 0x824   :  { %v857_v54 = vadd.f32 %v853_v52, %v3760_v34 }
 0x825   :  { %v2788_v60 = vmul.f32 -1.442695, %v856_v53 }
 0x826   :  { %3281 = vtanh.f32 %v857_v54  ;;  %v2789_v17 = vmul.f32 -1.442695, %v857_v54 }
 0x827   :  { %3283 = vpow2.f32 %v2788_v60 }
 0x830   :  { %v3282_v55 = vpop.eup %3281 }
 0x831   :  { %873 = vrot.lane.b32.xlu0 %v3282_v55, %s3565_s6  ;;  %v3284_v61 = vpop.eup %3283 }
 0x832   :  { %v864_v62 = vadd.f32 1.0, %v3284_v61 }
 0x834   :  { %3285 = vrcp.f32 %v864_v62 }
 0x83e   :  { %v3286_v0 = vpop.eup %3285 }
 0x83f   :  { %v992_v56 = vpop.permute.xlu0 %991  ;;  %v871_v8 = vmul.f32 %v3286_v0, %v3875_v11 }
 0x840   :  { %v994_v57 = vmul.f32 %v3278_v41, %v992_v56 }
 0x842   :  { %v1180_v51 = vrot.slane %v994_v57, 4  ;;  %v995_v2 = vmax.f32 %v994_v57, 0.0 }
 0x844   :  { %1181 = vrot.lane.b32.xlu1 %v1180_v51, %s3565_s6  ;;  %v1071_v6 = vrot.slane %v995_v2, 4 }
 0x8a3   :  { %v874_v1 = vpop.permute.xlu0 %873 }
 0x8a4   :  { %v876_v5 = vmul.f32 %v3286_v0, %v874_v1 }
 0x8a6   :  { %878 = vrot.lane.b32.xlu1 %v876_v5, %s3565_s6 }
 0x8aa   :  { %1072 = vrot.lane.b32.xlu1 %v1071_v6, %s3565_s6 }
 0x8b6   :  { %v1182_v7 = vpop.permute.xlu1 %1181 }
 0x8b7   :  { %2927 = vmatmul.mubr.msk.f32.vlgmr.msra.gmra.mrb[8].mxu1 %vm279_vm2, %v1182_v7 }
 0x8b8   :  { %3067 = vmatpush1.bf16.msra.mxu1 %v3796_v3  ;;  %1354 = vmatprep.mubr.f32.mxu1 %v3563_v35 }
 0x8b9   :  { %3069 = vmatprep.subr.bf16.mxu1 %v3798_v4 }
 0x8bc   :  { %3071 = vmatpush1.bf16.msra.mxu1 %v3802_v9 }
 0x8bd   :  { %3073 = vmatprep.subr.bf16.mxu1 %v3805_v10 }
 0x8c0   :  { %3075 = vmatpush1.bf16.msra.mxu1 %v3808_v15 }
 0x8c1   :  { %3078 = vmatprep.subr.msk.bf16.mxu1 %vm3814_vm8, %v3811_v16 }
 0x8c4   :  { %3081 = vmatpush1.bf16.msk.msra.mxu1 %vm3814_vm8, %v3819_v20 }
 0x8c5   :  { %3084 = vmatprep.subr.msk.bf16.mxu1 %vm3754_vm5, %v3779_v58 }
 0x918   :  { %v879_v12 = vpop.permute.xlu1 %878 }
 0x919   :  { %v3936_v13 = vadd.f32 %v879_v12, %v871_v8 }
 0x91b   :  { %3287 = vtanh.f32 %v3936_v13 }
 0x91c   :  { %3289 = vpow2.f32 %v2789_v17  ;;  %v1073_v30 = vpop.permute.xlu1 %1072 }
 0x925   :  { %v3288_v14 = vpop.eup %3287 }
 0x926   :  { %884 = vrot.lane.b32.xlu0 %v3288_v14, %s3565_s6  ;;  %v3290_v18 = vpop.eup %3289 }
 0x927   :  { %v865_v21 = vadd.f32 1.0, %v3290_v18 }
 0x929   :  { %3291 = vrcp.f32 %v865_v21 }
 0x933   :  { %v3292_v11 = vpop.eup %3291 }
 0x98a   :  { %v1251_v22 = vpop.f32.mrb[8].mxu1 }
 0x98b   :  { %v1256_v23 = vrot.slane %v1251_v22, 2  ;;  %v2928_v24 = vpop.f32.mrb[9].mxu1 }
 0x98d   :  { %v1258_v26 = vadd.f32 %v1256_v23, %v3770_v40 }
 0x98f   :  { %3293 = vtanh.f32 %v1258_v26  ;;  %v2803_v40 = vmul.f32 -1.442695, %v1258_v26 }
 0x991   :  { %3295 = vpow2.f32 %v2803_v40 }
 0x998   :  { %v885_v27 = vpop.permute.xlu0 %884 }
 0x999   :  { %v3294_v28 = vpop.eup %3293  ;;  %v887_v29 = vmul.f32 %v3292_v11, %v885_v27 }
 0x99a   :  { %1271 = vrot.lane.b32.xlu0 %v3294_v28, %s3564_s0 }
 0x99b   :  { %2795 = vmatmul.mubr.msk.f32.vlgmr.msra.gmra.mrb[6].mxu0 %vm403_vm9, %v887_v29  ;;  %v3296_v36 = vpop.eup %3295 }
 0x99c   :  { %3059 = vmatpush1.bf16.msk.msra.mxu0 %vm3754_vm5, %v3781_v59  ;;  %1140 = vmatprep.mubr.f32.mxu0 %v3563_v35  ;;  %v1262_v37 = vadd.f32 1.0, %v3296_v36 }
 0x99d   :  { %3088 = vmatprep.subr.bf16.mxu0 %v3560_v25 }
 0x99e   :  { %3297 = vrcp.f32 %v1262_v37 }
 0x9a3   :  { %2798 = vmatmul.mubr.msk.f32.vlgmr.msra.gmra.mrb[6].mxu0 %vm279_vm2, %v1073_v30 }
 0x9a4   :  { %3091 = vmatpush3.bf16.msk.msra.mxu0 %vm3754_vm5, %v3751_v31  ;;  %2933 = vmatprep.mubr.msk.f32.mxu0 %vm3562_vm6, %v3563_v35 }
 0x9a5   :  { %3093 = vmatprep.subr.bf16.mxu0 %v3794_v63 }
 0x9a8   :  { %v3298_v39 = vpop.eup %3297 }
 0x9a9   :  { %v1269_v46 = vmul.f32 %v3298_v39, %v1267_v45 }
 0xa0c   :  { %v1272_v41 = vpop.permute.xlu0 %1271 }
 0xa0d   :  { %v1274_v42 = vmul.f32 %v3298_v39, %v1272_v41 }
 0xa0f   :  { %1276 = vrot.lane.b32.xlu1 %v1274_v42, %s3564_s0 }
 0xa76   :  { %v1142_v43 = vpop.f32.mrb[6].mxu0 }
 0xa77   :  { %v1144_v44 = vpop.f32.mrb[7].mxu0  ;;  %v1147_v55 = vadd.f32 %v1142_v43, %v3758_v33 }
 0xa78   :  { %v1148_v50 = vadd.f32 %v1144_v44, %v3760_v34 }
 0xa79   :  { %v2799_v56 = vmul.f32 -1.442695, %v1147_v55 }
 0xa81   :  { %v1277_v47 = vpop.permute.xlu1 %1276 }
 0xa82   :  { %v3957_v49 = vadd.f32 %v1277_v47, %v1269_v46 }
 0xa84   :  { %3299 = vtanh.f32 %v3957_v49  ;;  %v1555_v42 = vrot.slane %v3957_v49, 6 }
 0xa85   :  { %3301 = vtanh.f32 %v1148_v50 }
 0xa86   :  { %3303 = vpow2.f32 %v2799_v56 }
 0xa8e   :  { %v3300_v52 = vpop.eup %3299 }
 0xa8f   :  { %1282 = vrot.lane.b32.xlu0 %v3300_v52, %s3564_s0  ;;  %v3302_v54 = vpop.eup %3301 }
 0xa90   :  { %v3304_v48 = vpop.eup %3303 }
 0xa91   :  { %v1155_v57 = vadd.f32 1.0, %v3304_v48 }
 0xa93   :  { %1164 = vrot.lane.b32.xlu0 %v3302_v54, %s3565_s6  ;;  %3305 = vrcp.f32 %v1155_v57 }
 0xa9d   :  { %v3306_v62 = vpop.eup %3305 }
 0xa9e   :  { %v1162_v6 = vmul.f32 %v3306_v62, %v3936_v13  ;;  %v2800_v13 = vmul.f32 -1.442695, %v1148_v50 }
 0xb01   :  { %v1283_v51 = vpop.permute.xlu0 %1282 }
 0xb02   :  { %v1285_v53 = vmul.f32 %v3298_v39, %v1283_v51 }
 0xb04   :  { %v1471_v60 = vrot.slane %v1285_v53, 6  ;;  %v1286_v0 = vmax.f32 %v1285_v53, 0.0 }
 0xb05   :  { %v1165_v61 = vpop.permute.xlu0 %1164 }
 0xb06   :  { %1472 = vrot.lane.b32.xlu1 %v1471_v60, %s3565_s6  ;;  %v1167_v1 = vmul.f32 %v3306_v62, %v1165_v61  ;;  %v1362_v2 = vrot.slane %v1286_v0, 6 }
 0xb0a   :  { %1169 = vrot.lane.b32.xlu1 %v1167_v1, %s3565_s6 }
 0xb0e   :  { %1363 = vrot.lane.b32.xlu1 %v1362_v2, %s3565_s6 }
 0xb78   :  { %v1473_v5 = vpop.permute.xlu1 %1472 }
 0xb79   :  { %2934 = vmatmul.mubr.msk.f32.vlgmr.msra.gmra.mrb[8].mxu0 %vm279_vm2, %v1473_v5 }
 0xb7a   :  { %3095 = vmatpush1.bf16.msra.mxu0 %v3796_v3  ;;  %1642 = vmatprep.mubr.f32.mxu0 %v3563_v35 }
 0xb7b   :  { %3097 = vmatprep.subr.bf16.mxu0 %v3798_v4 }
 0xb7c   :  { %v1170_v7 = vpop.permute.xlu1 %1169 }
 0xb7d   :  { %v3972_v8 = vadd.f32 %v1170_v7, %v1162_v6 }
 0xb7e   :  { %3099 = vmatpush1.bf16.msra.mxu0 %v3802_v9 }
 0xb7f   :  { %3307 = vtanh.f32 %v3972_v8  ;;  %3101 = vmatprep.subr.bf16.mxu0 %v3805_v10 }
 0xb80   :  { %3309 = vpow2.f32 %v2800_v13  ;;  %v1364_v23 = vpop.permute.xlu1 %1363 }
 0xb82   :  { %3103 = vmatpush1.bf16.msra.mxu0 %v3808_v15 }
 0xb83   :  { %3106 = vmatprep.subr.msk.bf16.mxu0 %vm3814_vm8, %v3811_v16 }
 0xb86   :  { %3109 = vmatpush1.bf16.msk.msra.mxu0 %vm3814_vm8, %v3819_v20 }
 0xb87   :  { %3112 = vmatprep.subr.msk.bf16.mxu0 %vm3754_vm5, %v3779_v58 }
 0xb89   :  { %v3308_v12 = vpop.eup %3307 }
 0xb8a   :  { %1175 = vrot.lane.b32.xlu0 %v3308_v12, %s3565_s6  ;;  %v3310_v14 = vpop.eup %3309 }
 0xb8b   :  { %v1156_v17 = vadd.f32 1.0, %v3310_v14 }
 0xb8d   :  { %3311 = vrcp.f32 %v1156_v17 }
 0xb97   :  { %v3312_v18 = vpop.eup %3311 }
 0xbfc   :  { %v1176_v21 = vpop.permute.xlu0 %1175 }
 0xbfd   :  { %v1178_v22 = vmul.f32 %v3312_v18, %v1176_v21 }
 0xbff   :  { %2806 = vmatmul.mubr.msk.f32.vlgmr.msra.gmra.mrb[10].mxu1 %vm403_vm9, %v1178_v22 }
 0xc00   :  { %3087 = vmatpush1.bf16.msk.msra.mxu1 %vm3754_vm5, %v3781_v59  ;;  %1431 = vmatprep.mubr.f32.mxu1 %v3563_v35 }
 0xc01   :  { %3116 = vmatprep.subr.bf16.mxu1 %v3560_v25 }
 0xc07   :  { %2809 = vmatmul.mubr.msk.f32.vlgmr.msra.gmra.mrb[10].mxu1 %vm279_vm2, %v1364_v23 }
 0xc08   :  { %3119 = vmatpush3.bf16.msk.msra.mxu1 %vm3754_vm5, %v3751_v31  ;;  %2940 = vmatprep.mubr.msk.f32.mxu1 %vm3562_vm6, %v3563_v35 }
 0xc09   :  { %3121 = vmatprep.subr.bf16.mxu1 %v3794_v63 }
 0xc4c   :  { %v1542_v24 = vpop.f32.mrb[8].mxu0 }
 0xc4d   :  { %v1546_v26 = vadd.f32 %v1542_v24, %v3768_v38  ;;  %v2935_v11 = vpop.f32.mrb[9].mxu0 }
 0xc4f   :  { %3313 = vtanh.f32 %v1546_v26  ;;  %v2814_v28 = vmul.f32 -1.442695, %v1546_v26 }
 0xc51   :  { %3315 = vpow2.f32 %v2814_v28 }
 0xc59   :  { %v3314_v27 = vpop.eup %3313 }
 0xc5a   :  { %1559 = vrot.lane.b32.xlu0 %v3314_v27, %s3564_s0 }
 0xc5b   :  { %v3316_v29 = vpop.eup %3315 }
 0xc5c   :  { %v1550_v30 = vadd.f32 1.0, %v3316_v29 }
 0xc5e   :  { %3317 = vrcp.f32 %v1550_v30 }
 0xc68   :  { %v3318_v40 = vpop.eup %3317 }
 0xc69   :  { %v1557_v43 = vmul.f32 %v3318_v40, %v1555_v42 }
 0xccc   :  { %v1560_v36 = vpop.permute.xlu0 %1559 }
 0xccd   :  { %v1562_v37 = vmul.f32 %v3318_v40, %v1560_v36 }
 0xccf   :  { %1564 = vrot.lane.b32.xlu1 %v1562_v37, %s3564_s0 }
 0xcda   :  { %v1433_v39 = vpop.f32.mrb[10].mxu1 }
 0xcdb   :  { %v1435_v41 = vpop.f32.mrb[11].mxu1  ;;  %v1438_v52 = vadd.f32 %v1433_v39, %v3758_v33 }
 0xcdc   :  { %v1439_v46 = vadd.f32 %v1435_v41, %v3760_v34 }
 0xcdd   :  { %v2810_v54 = vmul.f32 -1.442695, %v1438_v52 }
 0xcde   :  { %v2811_v5 = vmul.f32 -1.442695, %v1439_v46 }
 0xd41   :  { %v1565_v44 = vpop.permute.xlu1 %1564 }
 0xd42   :  { %v4005_v45 = vadd.f32 %v1565_v44, %v1557_v43 }
 0xd44   :  { %3319 = vtanh.f32 %v4005_v45  ;;  %v1844_v42 = vrot.slane %v4005_v45, 6 }
 0xd45   :  { %3321 = vtanh.f32 %v1439_v46 }
 0xd46   :  { %3323 = vpow2.f32 %v2810_v54 }
 0xd4e   :  { %v3320_v47 = vpop.eup %3319 }
 0xd4f   :  { %1570 = vrot.lane.b32.xlu0 %v3320_v47, %s3564_s0  ;;  %v3322_v50 = vpop.eup %3321 }
 0xd50   :  { %v3324_v49 = vpop.eup %3323 }
 0xd51   :  { %v1446_v55 = vadd.f32 1.0, %v3324_v49 }
 0xd53   :  { %1455 = vrot.lane.b32.xlu0 %v3322_v50, %s3565_s6  ;;  %3325 = vrcp.f32 %v1446_v55 }
 0xd5d   :  { %v3326_v57 = vpop.eup %3325 }
 0xd5e   :  { %v1453_v62 = vmul.f32 %v3326_v57, %v3972_v8 }
 0xdc1   :  { %v1571_v56 = vpop.permute.xlu0 %1570 }
 0xdc2   :  { %v1573_v48 = vmul.f32 %v3318_v40, %v1571_v56 }
 0xdc4   :  { %1758 = vrot.lane.b32.xlu1 %v1573_v48, %s3565_s6  ;;  %v1574_v60 = vmax.f32 %v1573_v48, 0.0 }
 0xdc5   :  { %v1456_v51 = vpop.permute.xlu0 %1455 }
 0xdc6   :  { %v1458_v53 = vmul.f32 %v3326_v57, %v1456_v51 }
 0xdc8   :  { %1460 = vrot.lane.b32.xlu1 %v1458_v53, %s3565_s6 }
 0xdcc   :  { %1650 = vrot.lane.b32.xlu1 %v1574_v60, %s3565_s6 }
 0xe36   :  { %v1759_v61 = vpop.permute.xlu1 %1758 }
 0xe37   :  { %2941 = vmatmul.mubr.msk.f32.vlgmr.msra.gmra.mrb[12].mxu1 %vm279_vm2, %v1759_v61 }
 0xe38   :  { %3123 = vmatpush1.bf16.msra.mxu1 %v3796_v3  ;;  %1931 = vmatprep.mubr.f32.mxu1 %v3563_v35 }
 0xe39   :  { %3125 = vmatprep.subr.bf16.mxu1 %v3798_v4 }
 0xe3a   :  { %v1461_v0 = vpop.permute.xlu1 %1460 }
 0xe3b   :  { %v4020_v1 = vadd.f32 %v1461_v0, %v1453_v62 }
 0xe3c   :  { %3127 = vmatpush1.bf16.msra.mxu1 %v3802_v9 }
 0xe3d   :  { %3327 = vtanh.f32 %v4020_v1  ;;  %3129 = vmatprep.subr.bf16.mxu1 %v3805_v10 }
 0xe3e   :  { %3329 = vpow2.f32 %v2811_v5  ;;  %v1651_v14 = vpop.permute.xlu1 %1650 }
 0xe40   :  { %3131 = vmatpush1.bf16.msra.mxu1 %v3808_v15 }
 0xe41   :  { %3134 = vmatprep.subr.msk.bf16.mxu1 %vm3814_vm8, %v3811_v16 }
 0xe44   :  { %3137 = vmatpush1.bf16.msk.msra.mxu1 %vm3814_vm8, %v3819_v20 }
 0xe45   :  { %3140 = vmatprep.subr.msk.bf16.mxu1 %vm3754_vm5, %v3779_v58 }
 0xe47   :  { %v3328_v2 = vpop.eup %3327 }
 0xe48   :  { %1466 = vrot.lane.b32.xlu0 %v3328_v2, %s3565_s6  ;;  %v3330_v6 = vpop.eup %3329 }
 0xe49   :  { %v1447_v7 = vadd.f32 1.0, %v3330_v6 }
 0xe4b   :  { %3331 = vrcp.f32 %v1447_v7 }
 0xe55   :  { %v3332_v8 = vpop.eup %3331 }
 0xeba   :  { %v1467_v12 = vpop.permute.xlu0 %1466 }
 0xebb   :  { %v1469_v13 = vmul.f32 %v3332_v8, %v1467_v12 }
 0xebd   :  { %2817 = vmatmul.mubr.msk.f32.vlgmr.msra.gmra.mrb[10].mxu0 %vm403_vm9, %v1469_v13 }
 0xebe   :  { %3115 = vmatpush1.bf16.msk.msra.mxu0 %vm3754_vm5, %v3781_v59  ;;  %1718 = vmatprep.mubr.f32.mxu0 %v3563_v35 }
 0xebf   :  { %3144 = vmatprep.subr.bf16.mxu0 %v3560_v25 }
 0xec5   :  { %2820 = vmatmul.mubr.msk.f32.vlgmr.msra.gmra.mrb[10].mxu0 %vm279_vm2, %v1651_v14 }
 0xec6   :  { %3147 = vmatpush3.bf16.msk.msra.mxu0 %vm3754_vm5, %v3751_v31  ;;  %2947 = vmatprep.mubr.msk.f32.mxu0 %vm3562_vm6, %v3563_v35 }
 0xec7   :  { %3149 = vmatprep.subr.bf16.mxu0 %v3794_v63 }
 0xf0a   :  { %v1828_v17 = vpop.f32.mrb[12].mxu1 }
 0xf0b   :  { %v1833_v18 = vrot.slane %v1828_v17, 6  ;;  %v2942_v21 = vpop.f32.mrb[13].mxu1 }
 0xf0d   :  { %v1835_v22 = vadd.f32 %v1833_v18, %v3768_v38 }
 0xf0f   :  { %3333 = vtanh.f32 %v1835_v22  ;;  %v2825_v24 = vmul.f32 -1.442695, %v1835_v22 }
 0xf11   :  { %3335 = vpow2.f32 %v2825_v24 }
 0xf19   :  { %v3334_v23 = vpop.eup %3333 }
 0xf1a   :  { %1848 = vrot.lane.b32.xlu0 %v3334_v23, %s3564_s0 }
 0xf1b   :  { %v3336_v26 = vpop.eup %3335 }
 0xf1c   :  { %v1839_v11 = vadd.f32 1.0, %v3336_v26 }
 0xf1e   :  { %3337 = vrcp.f32 %v1839_v11 }
 0xf28   :  { %v3338_v27 = vpop.eup %3337 }
 0xf29   :  { %v1846_v43 = vmul.f32 %v3338_v27, %v1844_v42 }
 0xf8c   :  { %v1849_v28 = vpop.permute.xlu0 %1848 }
 0xf8d   :  { %v1851_v29 = vmul.f32 %v3338_v27, %v1849_v28 }
 0xf8f   :  { %1853 = vrot.lane.b32.xlu1 %v1851_v29, %s3564_s0 }
 0xf98   :  { %v1720_v30 = vpop.f32.mrb[10].mxu0 }
 0xf99   :  { %v1722_v40 = vpop.f32.mrb[11].mxu0  ;;  %v1725_v39 = vadd.f32 %v1720_v30, %v3758_v33 }
 0xf9a   :  { %v1726_v36 = vadd.f32 %v1722_v40, %v3760_v34 }
 0xf9b   :  { %v2821_v41 = vmul.f32 -1.442695, %v1725_v39 }
 0xf9c   :  { %3339 = vtanh.f32 %v1726_v36  ;;  %v2822_v0 = vmul.f32 -1.442695, %v1726_v36 }
 0xf9d   :  { %3341 = vpow2.f32 %v2821_v41 }
 0xfa6   :  { %v3340_v37 = vpop.eup %3339 }
 0xfa7   :  { %1742 = vrot.lane.b32.xlu1 %v3340_v37, %s3565_s6  ;;  %v3342_v47 = vpop.eup %3341 }
 0xfa8   :  { %v1733_v50 = vadd.f32 1.0, %v3342_v47 }
0x1001   :  { %v1854_v44 = vpop.permute.xlu1 %1853 }
0x1002   :  { %v4056_v46 = vadd.f32 %v1854_v44, %v1846_v43 }
0x1004   :  { %3343 = vtanh.f32 %v4056_v46  ;;  %v2135_v43 = vrot.slane %v4056_v46, 6 }
0x1005   :  { %3345 = vrcp.f32 %v1733_v50 }
0x100e   :  { %v3344_v52 = vpop.eup %3343 }
0x100f   :  { %1859 = vrot.lane.b32.xlu0 %v3344_v52, %s3564_s0  ;;  %v3346_v54 = vpop.eup %3345 }
0x1010   :  { %v1740_v53 = vmul.f32 %v3346_v54, %v4020_v1 }
0x1019   :  { %v1743_v49 = vpop.permute.xlu1 %1742 }
0x101a   :  { %v1745_v55 = vmul.f32 %v3346_v54, %v1743_v49 }
0x101c   :  { %1747 = vrot.lane.b32.xlu1 %v1745_v55, %s3565_s6 }
0x1081   :  { %v1860_v56 = vpop.permute.xlu0 %1859 }
0x1082   :  { %v1862_v45 = vmul.f32 %v3338_v27, %v1860_v56 }
0x1084   :  { %v1863_v48 = vmax.f32 %v1862_v45, 0.0  ;;  %v2048_v57 = vrot.slane %v1862_v45, 2 }
0x1086   :  { %v1939_v51 = vrot.slane %v1863_v48, 2  ;;  %2049 = vrot.lane.b32.xlu0 %v2048_v57, %s3565_s6 }
0x1088   :  { %1940 = vrot.lane.b32.xlu1 %v1939_v51, %s3565_s6 }
0x108e   :  { %v1748_v60 = vpop.permute.xlu1 %1747 }
0x108f   :  { %v4064_v61 = vadd.f32 %v1748_v60, %v1740_v53 }
0x1091   :  { %3347 = vtanh.f32 %v4064_v61 }
0x1092   :  { %3349 = vpow2.f32 %v2822_v0 }
0x109b   :  { %v3348_v62 = vpop.eup %3347 }
0x109c   :  { %1753 = vrot.lane.b32.xlu0 %v3348_v62, %s3565_s6  ;;  %v3350_v1 = vpop.eup %3349 }
0x109d   :  { %v1734_v5 = vadd.f32 1.0, %v3350_v1 }
0x109f   :  { %3351 = vrcp.f32 %v1734_v5 }
0x10a9   :  { %v3352_v6 = vpop.eup %3351 }
0x10f8   :  { %v2050_v2 = vpop.permute.xlu0 %2049 }
0x10f9   :  { %2948 = vmatmul.mubr.msk.f32.vlgmr.msra.gmra.mrb[12].mxu0 %vm279_vm2, %v2050_v2 }
0x10fa   :  { %3151 = vmatpush1.bf16.msra.mxu0 %v3796_v3  ;;  %2222 = vmatprep.mubr.f32.mxu0 %v3563_v35  ;;  %v1941_v12 = vpop.permute.xlu1 %1940 }
0x10fb   :  { %3153 = vmatprep.subr.bf16.mxu0 %v3798_v4 }
0x10fe   :  { %3155 = vmatpush1.bf16.msra.mxu0 %v3802_v9 }
0x10ff   :  { %3157 = vmatprep.subr.bf16.mxu0 %v3805_v10 }
0x1102   :  { %3159 = vmatpush1.bf16.msra.mxu0 %v3808_v15 }
0x1103   :  { %3162 = vmatprep.subr.msk.bf16.mxu0 %vm3814_vm8, %v3811_v16 }
0x1106   :  { %3165 = vmatpush1.bf16.msk.msra.mxu0 %vm3814_vm8, %v3819_v20 }
0x1107   :  { %3168 = vmatprep.subr.msk.bf16.mxu0 %vm3754_vm5, %v3779_v58 }
0x110e   :  { %v1754_v7 = vpop.permute.xlu0 %1753 }
0x110f   :  { %v1756_v8 = vmul.f32 %v3352_v6, %v1754_v7 }
0x1111   :  { %2828 = vmatmul.mubr.msk.f32.vlgmr.msra.gmra.mrb[14].mxu1 %vm403_vm9, %v1756_v8 }
0x1112   :  { %3143 = vmatpush1.bf16.msk.msra.mxu1 %vm3754_vm5, %v3781_v59  ;;  %2008 = vmatprep.mubr.f32.mxu1 %v3563_v35 }
0x1113   :  { %3172 = vmatprep.subr.bf16.mxu1 %v3560_v25 }
0x1119   :  { %2831 = vmatmul.mubr.msk.f32.vlgmr.msra.gmra.mrb[14].mxu1 %vm279_vm2, %v1941_v12 }
0x111a   :  { %3175 = vmatpush3.bf16.msk.msra.mxu1 %vm3754_vm5, %v3751_v31  ;;  %2954 = vmatprep.mubr.msk.f32.mxu1 %vm3562_vm6, %v3563_v35 }
0x111b   :  { %3177 = vmatprep.subr.bf16.mxu1 %v3794_v63 }
0x11cc   :  { %v2119_v13 = vpop.f32.mrb[12].mxu0 }
0x11cd   :  { %v2124_v14 = vrot.slane %v2119_v13, 4  ;;  %v2949_v17 = vpop.f32.mrb[13].mxu0 }
0x11cf   :  { %v2126_v18 = vadd.f32 %v2124_v14, %v3768_v38 }
0x11d1   :  { %3353 = vtanh.f32 %v2126_v18  ;;  %v2836_v26 = vmul.f32 -1.442695, %v2126_v18 }
0x11db   :  { %v3354_v21 = vpop.eup %3353 }
0x11dc   :  { %2139 = vrot.lane.b32.xlu0 %v3354_v21, %s3564_s0 }
0x11ec   :  { %v2010_v22 = vpop.f32.mrb[14].mxu1 }
0x11ed   :  { %v2012_v23 = vpop.f32.mrb[15].mxu1  ;;  %v2015_v27 = vadd.f32 %v2010_v22, %v3758_v33 }
0x11ee   :  { %v2016_v24 = vadd.f32 %v2012_v23, %v3760_v34 }
0x11ef   :  { %v2832_v29 = vmul.f32 -1.442695, %v2015_v27 }
0x11f0   :  { %3355 = vtanh.f32 %v2016_v24  ;;  %v2833_v46 = vmul.f32 -1.442695, %v2016_v24 }
0x11f1   :  { %3357 = vpow2.f32 %v2836_v26 }
0x11fa   :  { %v3356_v31 = vpop.eup %3355 }
0x11fb   :  { %2032 = vrot.lane.b32.xlu0 %v3356_v31, %s3565_s6  ;;  %v3358_v63 = vpop.eup %3357 }
0x11fc   :  { %v2130_v11 = vadd.f32 1.0, %v3358_v63 }
0x11fe   :  { %3359 = vrcp.f32 %v2130_v11 }
0x11ff   :  { %3361 = vpow2.f32 %v2832_v29 }
0x1208   :  { %v3360_v28 = vpop.eup %3359 }
0x1209   :  { %v3362_v36 = vpop.eup %3361  ;;  %v2137_v44 = vmul.f32 %v3360_v28, %v2135_v43 }
0x120a   :  { %v2023_v37 = vadd.f32 1.0, %v3362_v36 }
0x120c   :  { %3363 = vrcp.f32 %v2023_v37 }
0x1216   :  { %v3364_v39 = vpop.eup %3363 }
0x1217   :  { %v2030_v54 = vmul.f32 %v3364_v39, %v4064_v61 }
0x124e   :  { %v2140_v30 = vpop.permute.xlu0 %2139 }
0x124f   :  { %v2142_v40 = vmul.f32 %v3360_v28, %v2140_v30 }
0x1251   :  { %2144 = vrot.lane.b32.xlu1 %v2142_v40, %s3564_s0 }
0x126d   :  { %v2033_v41 = vpop.permute.xlu0 %2032 }
0x126e   :  { %v2035_v42 = vmul.f32 %v3364_v39, %v2033_v41 }
0x1270   :  { %2037 = vrot.lane.b32.xlu0 %v2035_v42, %s3565_s6 }
0x12c3   :  { %v2145_v47 = vpop.permute.xlu1 %2144 }
0x12c4   :  { %v4105_v50 = vadd.f32 %v2145_v47, %v2137_v44 }
0x12c6   :  { %3365 = vtanh.f32 %v4105_v50  ;;  %v2426_v26 = vrot.slane %v4105_v50, 6 }
0x12d0   :  { %v3366_v52 = vpop.eup %3365 }
0x12d1   :  { %2150 = vrot.lane.b32.xlu1 %v3366_v52, %s3564_s0 }
0x12e2   :  { %v2038_v49 = vpop.permute.xlu0 %2037 }
0x12e3   :  { %v4110_v55 = vadd.f32 %v2038_v49, %v2030_v54 }
0x12e5   :  { %3367 = vtanh.f32 %v4110_v55 }
0x12e6   :  { %3369 = vpow2.f32 %v2833_v46 }
0x12ef   :  { %v3368_v56 = vpop.eup %3367 }
0x12f0   :  { %2043 = vrot.lane.b32.xlu0 %v3368_v56, %s3565_s6  ;;  %v3370_v60 = vpop.eup %3369 }
0x12f1   :  { %v2024_v61 = vadd.f32 1.0, %v3370_v60  ;;  %v2631_v60 = vld [vmem:[%s4216_s7 + $0x8] sm:$0xff] }
0x12f3   :  { %3371 = vrcp.f32 %v2024_v61 }
0x12fd   :  { %v3372_v62 = vpop.eup %3371 }
0x1343   :  { %v2151_v45 = vpop.permute.xlu1 %2150 }
0x1344   :  { %v2153_v48 = vmul.f32 %v3360_v28, %v2151_v45 }
0x1346   :  { %v2154_v57 = vmax.f32 %v2153_v48, 0.0  ;;  %v2339_v51 = vrot.slane %v2153_v48, 4 }
0x1348   :  { %2340 = vrot.lane.b32.xlu1 %v2339_v51, %s3565_s6  ;;  %v2230_v53 = vrot.slane %v2154_v57, 4 }
0x134c   :  { %2231 = vrot.lane.b32.xlu1 %v2230_v53, %s3565_s6 }
0x1362   :  { %v2044_v0 = vpop.permute.xlu0 %2043 }
0x1363   :  { %v2046_v2 = vmul.f32 %v3372_v62, %v2044_v0  ;;  %v2633_v62 = vld [vmem:[%s4216_s7 + $0x18] sm:$0xff] }
0x1365   :  { %2839 = vmatmul.mubr.msk.f32.vlgmr.msra.gmra.mrb[14].mxu0 %vm403_vm9, %v2046_v2  ;;  %v2634_v2 = vld [vmem:[%s4216_s7 + $0x20] sm:$0xff] }
0x1366   :  { %3171 = vmatpush1.bf16.msk.msra.mxu0 %vm3754_vm5, %v3781_v59  ;;  %2299 = vmatprep.mubr.f32.mxu0 %v3563_v35 }
0x1367   :  { %3200 = vmatprep.subr.bf16.mxu0 %v3560_v25 }
0x13ba   :  { %v2341_v1 = vpop.permute.xlu1 %2340 }
0x13bb   :  { %2955 = vmatmul.mubr.msk.f32.vlgmr.msra.gmra.mrb[16].mxu1 %vm279_vm2, %v2341_v1  ;;  %v2635_v1 = vld [vmem:[%s4216_s7 + $0x28] sm:$0xff] }
0x13bc   :  { %3179 = vmatpush1.bf16.msra.mxu1 %v3796_v3  ;;  %2513 = vmatprep.mubr.f32.mxu1 %v3563_v35 }
0x13bd   :  { %3181 = vmatprep.subr.bf16.mxu1 %v3798_v4 }
0x13be   :  { %v2232_v5 = vpop.permute.xlu1 %2231 }
0x13bf   :  { %2842 = vmatmul.mubr.msk.f32.vlgmr.msra.gmra.mrb[14].mxu0 %vm279_vm2, %v2232_v5  ;;  %v3207_v5 = vpack.c.bf16 %v2635_v1, %v2634_v2 }
0x13c0   :  { %3183 = vmatpush1.bf16.msra.mxu1 %v3802_v9  ;;  %2973 = vmatprep.mubr.msk.f32.mxu0 %vm3562_vm6, %v3563_v35 }
0x13c1   :  { %3185 = vmatprep.subr.bf16.mxu1 %v3805_v10 }
0x13c4   :  { %3187 = vmatpush1.bf16.msra.mxu1 %v3808_v15 }
0x13c5   :  { %3190 = vmatprep.subr.msk.bf16.mxu1 %vm3814_vm8, %v3811_v16 }
0x13c8   :  { %3193 = vmatpush1.bf16.msk.msra.mxu1 %vm3814_vm8, %v3819_v20 }
0x13c9   :  { %3196 = vmatprep.subr.msk.bf16.mxu1 %vm3754_vm5, %v3779_v58 }
0x148e   :  { %v2410_v3 = vpop.f32.mrb[16].mxu1 }
0x148f   :  { %v2415_v4 = vrot.slane %v2410_v3, 2  ;;  %v2956_v9 = vpop.f32.mrb[17].mxu1 }
0x1490   :  { %v2637_v9 = vld [vmem:[%s4216_s7 + $0x38] sm:$0xf] }
0x1491   :  { %v2417_v6 = vadd.f32 %v2415_v4, %v3768_v38  ;;  %v2636_v4 = vld [vmem:[%s4216_s7 + $0x30] sm:$0xff] }
0x1492   :  { %v2301_v10 = vpop.f32.mrb[14].mxu0 }
0x1493   :  { %3373 = vtanh.f32 %v2417_v6  ;;  %v2303_v15 = vpop.f32.mrb[15].mxu0  ;;  %v2306_v20 = vadd.f32 %v2301_v10, %v3758_v33  ;;  %v2847_v58 = vmul.f32 -1.442695, %v2417_v6  ;;  %v3210_v10 = vpack.c.bf16 %v2637_v9, %v2636_v4 }
0x1494   :  { %v2307_v7 = vadd.f32 %v2303_v15, %v3760_v34 }
0x1495   :  { %v2843_v12 = vmul.f32 -1.442695, %v2306_v20 }
0x1496   :  { %3375 = vtanh.f32 %v2307_v7  ;;  %v2844_v37 = vmul.f32 -1.442695, %v2307_v7 }
0x1497   :  { %3377 = vpow2.f32 %v2847_v58 }
0x1498   :  { %3379 = vpow2.f32 %v2843_v12 }
0x149d   :  { %v3374_v16 = vpop.eup %3373 }
0x149e   :  { %2430 = vrot.lane.b32.xlu0 %v3374_v16, %s3564_s0 }
0x14a0   :  { %v3376_v8 = vpop.eup %3375 }
0x14a1   :  { %2323 = vrot.lane.b32.xlu1 %v3376_v8, %s3565_s6  ;;  %v3378_v13 = vpop.eup %3377 }
0x14a2   :  { %v3380_v38 = vpop.eup %3379  ;;  %v2421_v14 = vadd.f32 1.0, %v3378_v13 }
0x14a3   :  { %v2314_v17 = vadd.f32 1.0, %v3380_v38  ;;  %v2856_v38 = vld [vmem:[#allocation12] ss:$0 sm:$0xff] }
0x14a4   :  { %3381 = vrcp.f32 %v2421_v14 }
0x14a5   :  { %3383 = vrcp.f32 %v2314_v17 }
0x14ae   :  { %v3382_v18 = vpop.eup %3381 }
0x14af   :  { %v3384_v23 = vpop.eup %3383  ;;  %v2428_v63 = vmul.f32 %v3382_v18, %v2426_v26 }
0x14b0   :  { %v2321_v28 = vmul.f32 %v3384_v23, %v4110_v55 }
0x1510   :  { %v2431_v21 = vpop.permute.xlu0 %2430 }
0x1511   :  { %v2433_v22 = vmul.f32 %v3382_v18, %v2431_v21 }
0x1513   :  { %2435 = vrot.lane.b32.xlu0 %v2433_v22, %s3564_s0  ;;  %v2324_v24 = vpop.permute.xlu1 %2323 }
0x1514   :  { %v2326_v31 = vmul.f32 %v3384_v23, %v2324_v24 }
0x1516   :  { %2328 = vrot.lane.b32.xlu1 %v2326_v31, %s3565_s6 }
0x1585   :  { %v2436_v11 = vpop.permute.xlu0 %2435 }
0x1586   :  { %v2438_v27 = vadd.f32 %v2436_v11, %v2428_v63 }
0x1588   :  { %3385 = vtanh.f32 %v2438_v27  ;;  %v2329_v29 = vpop.permute.xlu1 %2328 }
0x1589   :  { %v2331_v30 = vadd.f32 %v2329_v29, %v2321_v28 }
0x158b   :  { %3387 = vtanh.f32 %v2331_v30 }
0x158c   :  { %3389 = vpow2.f32 %v2844_v37 }
0x1592   :  { %v3386_v40 = vpop.eup %3385 }
0x1593   :  { %2441 = vrot.lane.b32.xlu0 %v3386_v40, %s3564_s0 }
0x1595   :  { %v3388_v36 = vpop.eup %3387 }
0x1596   :  { %2334 = vrot.lane.b32.xlu1 %v3388_v36, %s3565_s6  ;;  %v3390_v39 = vpop.eup %3389 }
0x1597   :  { %v2315_v41 = vadd.f32 1.0, %v3390_v39 }
0x1599   :  { %3391 = vrcp.f32 %v2315_v41 }
0x15a3   :  { %v3392_v44 = vpop.eup %3391 }
0x1605   :  { %v2442_v42 = vpop.permute.xlu0 %2441 }
0x1606   :  { %v2444_v43 = vmul.f32 %v3382_v18, %v2442_v42 }
0x1608   :  { %v2445_v47 = vmax.f32 %v2444_v43, 0.0  ;;  %v2335_v50 = vpop.permute.xlu1 %2334 }
0x1609   :  { %v2337_v52 = vmul.f32 %v3392_v44, %v2335_v50 }
0x160a   :  { %v2521_v54 = vrot.slane %v2445_v47, 6 }
0x160b   :  { %2850 = vmatmul.mubr.msk.f32.vlgmr.msra.gmra.mrb[18].mxu1 %vm403_vm9, %v2337_v52 }
0x160c   :  { %2522 = vrot.lane.b32.xlu0 %v2521_v54, %s3565_s6  ;;  %3199 = vmatpush1.bf16.msk.msra.mxu1 %vm3754_vm5, %v3781_v59 }
0x160d   :  { %2590 = vmatprep.mubr.f32.mxu1 %v3563_v35 }
0x167e   :  { %v2523_v49 = vpop.permute.xlu0 %2522 }
0x167f   :  { %2853 = vmatmul.mubr.msk.f32.vlgmr.msra.gmra.mrb[18].mxu1 %vm279_vm2, %v2523_v49 }
0x1752   :  { %v2592_v55 = vpop.f32.mrb[18].mxu1 }
0x1753   :  { %v2594_v56 = vpop.f32.mrb[19].mxu1  ;;  %v2597_v48 = vadd.f32 %v2592_v55, %v3758_v33  ;;  %v2632_v33 = vld [vmem:[%s4216_s7 + $0x10] sm:$0xff] }
0x1754   :  { %v2598_v46 = vadd.f32 %v2594_v56, %v3760_v34  ;;  %v2630_v34 = vld [vmem:[%s4216_s7] sm:$0xff]  ;;  %v3204_v0 = vpack.c.bf16 %v2633_v62, %v2632_v33  ;;  %s3566_s7 = smov [#allocation13]  }
0x1755   :  { %v2854_v57 = vmul.f32 -1.442695, %v2597_v48  ;;  %v3201_v61 = vpack.c.bf16 %v2631_v60, %v2630_v34  ;;  %s2741_s28 = sshll.u32 %s3566_s7, 4  ;;  %s2742_s28 = int_to_ptr.vmem [resolvable:$true] %s2741_s28 }
0x1756   :  { %3393 = vtanh.f32 %v2598_v46  ;;  %s3519_s29 = scalar_lea.vmem %s2742_s28, 32  ;;  %p3524_p13 = scmp.lt.s32.totalorder %s2742_s28, %s2742_s28 }
0x1757   :  { %3395 = vpow2.f32 %v2854_v57  ;;  %3202 = vmatpush3.bf16.msra.mxu0 %v3201_v61  ;;  %p3520_p12 = scmp.ne.s32.totalorder %s2742_s28, %s3519_s29  ;;  %p3525_p0 = scmp.lt.s32.totalorder %s3519_s29, %s3519_s29 }
0x1758   :  { %3203 = vmatprep.subr.bf16.mxu0 %v3560_v25 }
0x1759   :  { %p3526_p1 = por %p3525_p0, %p3524_p13 }
0x175b   :  { %3205 = vmatpush3.bf16.msra.mxu0 %v3204_v0  ;;  %p3527_p2 = pnand %p3526_p1, %p3520_p12 }
0x175c   :  { %3206 = vmatprep.subr.bf16.mxu0 %v3560_v25 }
0x175f   :  { %3208 = vmatpush3.bf16.msra.mxu0 %v3207_v5 }
0x1760   :  { %v3394_v45 = vpop.eup %3393  ;;  %3209 = vmatprep.subr.bf16.mxu0 %v3560_v25  ;;  %v2855_v25 = vmul.f32 -1.442695, %v2598_v46 }
0x1761   :  { %2614 = vrot.lane.b32.xlu1 %v3394_v45, %s3565_s6  ;;  %v3396_v51 = vpop.eup %3395 }
0x1762   :  { %v2605_v32 = vadd.f32 1.0, %v3396_v51 }
0x1763   :  { %3212 = vmatpush3.bf16.msk.msra.mxu0 %vm3814_vm8, %v3210_v10 }
0x1764   :  { %3397 = vrcp.f32 %v2605_v32 }
0x176e   :  { %v3398_v59 = vpop.eup %3397 }
0x176f   :  { %v2612_v3 = vmul.f32 %v3398_v59, %v2331_v30 }
0x17d3   :  { %v2615_v35 = vpop.permute.xlu1 %2614 }
0x17d4   :  { %v2617_v53 = vmul.f32 %v3398_v59, %v2615_v35 }
0x17d6   :  { %2619 = vrot.lane.b32.xlu0 %v2617_v53, %s3565_s6 }
0x1848   :  { %v2620_v6 = vpop.permute.xlu0 %2619 }
0x1849   :  { %v2622_v15 = vadd.f32 %v2620_v6, %v2612_v3 }
0x184b   :  { %3399 = vtanh.f32 %v2622_v15 }
0x184c   :  { %3401 = vpow2.f32 %v2855_v25 }
0x1855   :  { %v3400_v7 = vpop.eup %3399 }
0x1856   :  { %2625 = vrot.lane.b32.xlu1 %v3400_v7, %s3565_s6  ;;  %v3402_v16 = vpop.eup %3401 }
0x1857   :  { %v2606_v8 = vadd.f32 1.0, %v3402_v16 }
0x1859   :  { %3403 = vrcp.f32 %v2606_v8 }
0x1863   :  { %v3404_v20 = vpop.eup %3403 }
0x18c8   :  { %v2626_v58 = vpop.permute.xlu1 %2625 }
0x18c9   :  { %v2628_v12 = vmul.f32 %v3404_v20, %v2626_v58 }
0x18cb   :  { %v2629_v13 = vmax.f32 %v2628_v12, 0.0 }
0x18cd   :  { %2974 = vmatmul.mubr.msk.f32.vlgmr.msra.gmra.mrb[16].mxu0 %vm403_vm9, %v2629_v13 }
0x19a0   :  { %v2717_v14 = vpop.f32.mrb[16].mxu0 }
0x19a1   :  { %v2718_v19 = vadd.f32 %v2856_v38, %v2717_v14  ;;  %v2975_v17 = vpop.f32.mrb[17].mxu0 }
0x19a3   :  { %v2722_v18 = vsel %vm2721_vm10, %v2718_v19, -inf }
0x19a4   :  { %2723 = vmax.xlane.f32.xlu0 %v2722_v18 }
0x1a31   :  { %v2724_v21 = vpop.xlane.xlu0 %2723 }
0x1a32   :  { %v2725_v22 = vsub.f32 %v2718_v19, %v2724_v21 }
0x1a34   :  { %v2726_v23 = vmul.f32 1.442695, %v2725_v22 }
0x1a36   :  { %3405 = vpow2.f32 %v2726_v23 }
0x1a40   :  { %v3406_v24 = vpop.eup %3405 }
0x1a41   :  { %v2728_v31 = vsel %vm2721_vm10, %v3406_v24, 0.0 }
0x1a42   :  { %2729 = vadd.xlane.f32.xlu1 %v2728_v31 }
0x1acf   :  { %v2730_v26 = vpop.xlane.xlu1 %2729 }
0x1ad0   :  { %3407 = vlog2.f32 %v2730_v26 }
0x1ada   :  { %v3408_v63 = vpop.eup %3407 }
0x1adb   :  { %v2732_v11 = vmul.f32 0.6931472, %v3408_v63 }
0x1add   :  { %v2733_v27 = vsub.f32 %v2725_v22, %v2732_v11 }
0x1adf   :  { %2734 = vst.msk [vmem:[#allocation13] sm:$0x3] %vm2721_vm10, %v2733_v27 }
0x1ae0   :  { %3530 = shalt.err (!%p3527_p2)
}
0x1ae1   :  { %s3531_s2 = scalar_lea.hbm %s4218_s9, 32 }
0x1ae2   :  { %p3532_p3 = scmp.ne.s32.totalorder %s4218_s9, %s3531_s2  ;;  %p3535_p4 = scmp.lt.u32.totalorder %s3531_s2, %s4218_s9 }
0x1ae4   :  { %p3537_p5 = pnand %p3535_p4, %p3532_p3 }
0x1ae6   :  { %3540 = shalt.err (!%p3537_p5)
}
0x1ae7   :  { %2744 = dma.vmem_to_hbm [thread:$0]  %s2742_s28, 32, %s4218_s9, [#allocation6]  }
0x1ae8   :  { %3549 = dma.done.wait [#allocation6], 32  }
0x1ae9   :  { %3550 = vsyncadd [#allocation6], 4294967264 }
0x1aea   :  { %2748 = vsyncpa [#allocation5], 1 }
0x1aeb   :  { %2749 = vsyncpa [#allocation8], 1 }
0x1aec   :  { %2750 = vsyncpa [#allocation11], 1 }
0x1aed   :  { %2751 = vsyncpa [#allocation6], 1 }
0x1aee   :  { %2752 = vsyncmov [#allocation3] }
0x1af1   :  { %s2753_s0 = vpop.sfrf %2752 }
0x1af2   :  { %p2859_p6 = scmp.ne.s32.totalorder %s2753_s0, 0 }
0x1af4   :  { %2757 = shalt.err (%p2859_p6)  }

</bundles_post_ra>
